<compile_context>
chip_gen: v7x
topology: tpu7x:2x2x1
jax: 0.10.0
libtpu: 0.0.40
codegen_flags: <defaults>
</compile_context>

<pallas_src>
import functools

import jax
import jax.numpy as jnp
from jax import lax
from jax.experimental import pallas as pl
from jax.experimental.pallas import tpu as pltpu


def _phase_taps():
    """Group the 25 taps of the merged 5x5 stride-2 conv by spatial parity."""
    taps = [[] for _ in range(4)]
    for dr in range(5):
        for dc in range(5):
            taps[(dr % 2) * 2 + (dc % 2)].append((dr, dc))
    return taps  # tap counts per phase: 9, 6, 6, 4


def _round_up(x, m):
    return ((x + m - 1) // m) * m


def _vmem_limits():
    """Chip-aware scoped-VMEM limit and per-step working-set budget."""
    phys = 64 * 1024 * 1024            # conservative default (v7x-sized VMEM)
    try:
        phys = int(pltpu.get_tpu_info().vmem_capacity_bytes)
    except Exception:
        pass
    limit = min(int(phys * 0.78), 100 * 1024 * 1024)
    budget = min(int(phys * 0.50), 72 * 1024 * 1024)
    return limit, budget


def _step_bytes(oh_t, rows_in_block, ow_pad, ow, c, cout_t):
    inp = 4 * rows_in_block * ow_pad * c * 2      # bf16 phase block
    wgt = 25 * c * cout_t * 2                     # bf16 weight block
    bias = cout_t * 4
    outb = oh_t * ow * cout_t * 4                 # fp32 output block
    acc = oh_t * ow * cout_t * 4                  # fp32 accumulator
    return 2 * (inp + wgt + bias + outb) + acc    # ~double buffering


def _choose_cout_tile(c, max_cout):
    """Output-channel tile: multiple of 128 dividing C (or full C)."""
    if c % 128 != 0:
        return c
    cap = c if max_cout is None else max(1, min(c, max_cout))
    target = min(cap, c if c <= 256 else 256)     # cap weight blocks at 256 out-ch
    t = (target // 128) * 128
    while t >= 128 and c % t != 0:
        t -= 128
    return t if t >= 128 else c


def _choose_row_tiling(oh, ow, ow_pad, c, cout_t, budget, max_rows,
                       force_windowed):
    """Largest row tile that fits the budget; prefer the resident-rows path."""
    cap = oh if max_rows is None else max(1, min(oh, max_rows))
    if not force_windowed:
        for oh_t in range(cap, 0, -1):
            oh_r = pl.cdiv(oh, oh_t) * oh_t
            if _step_bytes(oh_t, oh_r + 2, ow_pad, ow, c, cout_t) <= budget:
                return oh_t, True
    for oh_t in range(cap, 0, -1):
        if _step_bytes(oh_t, oh_t + 2, ow_pad, ow, c, cout_t) <= budget:
            return oh_t, False
    return 1, False


def _downsample_kernel(ph_ref, w_ref, b_ref, out_ref, *, taps, oh_t, ow, c,
                       rows_resident):
    # ph_ref : (4, R, ow_pad, C) bf16.  R = oh_rounded+2 (resident rows) or
    #          oh_t+2 (pre-windowed fallback).
    # w_ref  : (25, C, cout_t) bf16 merged-conv weights (tap-major).
    # b_ref  : (1, cout_t) fp32 (b1 + b2).
    # out_ref: (oh_t*ow, cout_t) fp32 flat, lane-dense output block.
    cout = out_ref.shape[-1]
    base = pl.program_id(1) * oh_t if rows_resident else 0
    acc = jnp.zeros((oh_t * ow, cout), jnp.float32)
    k = 0
    for p in range(4):
        for (dr, dc) in taps[p]:
            rs, cs = dr // 2, dc // 2
            patch = ph_ref[p, pl.ds(base + rs, oh_t), cs:cs + ow, :]
            acc = acc + jnp.dot(patch.reshape(oh_t * ow, c), w_ref[k],
                                preferred_element_type=jnp.float32)
            k += 1
    out_ref[...] = (acc + b_ref[...]).astype(out_ref.dtype)


def downsample_pallas(x, w1, b1, w2, b2, temb=None, cemb=None, *,
                      out_format="NCHW", max_rows_per_tile=None,
                      max_cout_per_tile=None, force_row_windows=False):
    """DownSample.forward: conv3x3(s2,p1)(x) + conv5x5(s2,p2)(x).

    x: (N, C, H, W) fp32 with even H, W.  Returns (N, C, H//2, W//2) (NCHW) or
    NHWC when out_format="NHWC".
    """
    del temb, cemb                       # DownSample.forward ignores the embeddings
    n, c, h, w = x.shape
    assert h % 2 == 0 and w % 2 == 0, "DownSample kernel assumes even H, W"
    assert w1.shape == (c, c, 3, 3) and w2.shape == (c, c, 5, 5)
    oh, ow = h // 2, w // 2
    taps = _phase_taps()

    vmem_limit, vmem_budget = _vmem_limits()
    cout_t = _choose_cout_tile(c, max_cout_per_tile)
    ow_pad = _round_up(ow + 2, 8)        # phase width -> multiple of 8 sublanes
    oh_t, rows_resident = _choose_row_tiling(
        oh, ow, ow_pad, c, cout_t, vmem_budget, max_rows_per_tile,
        force_row_windows)
    n_tiles = pl.cdiv(oh, oh_t)
    oh_r = n_tiles * oh_t
    n_co = c // cout_t

    # --- one fused producer pass: NCHW->NHWC, bf16 cast, pad, parity split ---
    x_nhwc = jnp.transpose(x, (0, 2, 3, 1)).astype(jnp.bfloat16)
    pad_r = 2 + 2 * (oh_r - oh)          # bottom pad so row tiles cover exactly
    pad_c = 2 + 2 * (ow_pad - (ow + 2))  # right pad -> phase width % 8 == 0
    x_pad = jnp.pad(x_nhwc, ((0, 0), (2, pad_r), (2, pad_c), (0, 0)))
    phases = jnp.stack(
        [x_pad[:, pr::2, pc::2, :] for pr in (0, 1) for pc in (0, 1)],
        axis=1)                          # (N, 4, oh_r+2, ow_pad, C) bf16

    if rows_resident:
        # Full row extent resident per batch; block index ignores (t, co) so the
        # activation is DMA'd once per batch and windows are sliced in-kernel.
        ph_spec = pl.BlockSpec((None, 4, oh_r + 2, ow_pad, c),
                               lambda nn, t, co: (nn, 0, 0, 0, 0))
    else:
        # Fallback for very large shapes: duplicate the 2-row halo per tile
        # (extra HBM pass) and fetch non-overlapping windows via the grid.
        row_idx = (jnp.arange(n_tiles)[:, None] * oh_t
                   + jnp.arange(oh_t + 2)[None, :])
        phases = jnp.take(phases, row_idx, axis=2)   # (N,4,nt,oh_t+2,ow_pad,C)
        ph_spec = pl.BlockSpec((None, 4, None, oh_t + 2, ow_pad, c),
                               lambda nn, t, co: (nn, 0, t, 0, 0, 0))

    # --- merged conv weights: 3x3 embedded in the centre of the 5x5 ---
    w1_hwio = jnp.transpose(w1, (2, 3, 1, 0))        # (3,3,Cin,Cout)
    w2_hwio = jnp.transpose(w2, (2, 3, 1, 0))        # (5,5,Cin,Cout)
    w_comb = w2_hwio.at[1:4, 1:4].add(w1_hwio)       # merge in fp32
    order = [td for p in range(4) for td in taps[p]]
    w_stk = jnp.stack([w_comb[dr, dc] for (dr, dc) in order],
                      axis=0).astype(jnp.bfloat16)   # (25, Cin, Cout) bf16
    bias = (b1 + b2).reshape(1, c).astype(jnp.float32)

    # TODO(synk): single-buffer the constant weight/bias operands
    # (pipeline_mode=pl.Buffered(1)) once that knob is validated everywhere.
    w_spec = pl.BlockSpec((25, c, cout_t), lambda nn, t, co: (0, 0, co))
    b_spec = pl.BlockSpec((1, cout_t), lambda nn, t, co: (0, co))
    out_spec = pl.BlockSpec((None, None, oh_t * ow, cout_t),
                            lambda nn, t, co: (nn, t, 0, co))

    kernel = functools.partial(_downsample_kernel, taps=taps, oh_t=oh_t, ow=ow,
                               c=c, rows_resident=rows_resident)

    out_flat = pl.pallas_call(
        kernel,
        out_shape=jax.ShapeDtypeStruct((n, n_tiles, oh_t * ow, c), x.dtype),
        grid_spec=pltpu.PrefetchScalarGridSpec(
            num_scalar_prefetch=0,
            grid=(n, n_tiles, n_co),
            in_specs=[ph_spec, w_spec, b_spec],
            out_specs=out_spec,
        ),
        compiler_params=pltpu.CompilerParams(
            dimension_semantics=("parallel", "parallel", "parallel"),
            vmem_limit_bytes=vmem_limit,
        ),
    )(phases, w_stk, bias)

    out_nhwc = out_flat.reshape(n, oh_r, ow, c)[:, :oh]   # crop padded tail rows
    if out_format == "NHWC":
        return out_nhwc
    # TODO(synk): skip this extra HBM pass when the consumer accepts NHWC.
    return jnp.transpose(out_nhwc, (0, 3, 1, 2))


def _reference(x, w1, b1, w2, b2):
    dn = ("NCHW", "OIHW", "NCHW")
    y1 = lax.conv_general_dilated(x, w1, (2, 2), ((1, 1), (1, 1)),
                                  dimension_numbers=dn) + b1[None, :, None, None]
    y2 = lax.conv_general_dilated(x, w2, (2, 2), ((2, 2), (2, 2)),
                                  dimension_numbers=dn) + b2[None, :, None, None]
    return y1 + y2


def _check(name, out, ref, rel_tol=2e-2):
    assert out.shape == ref.shape, (name, out.shape, ref.shape)
    diff = (out - ref).astype(jnp.float32)
    rel = float(jnp.linalg.norm(diff) / (jnp.linalg.norm(ref.astype(jnp.float32)) + 1e-12))
    mx = float(jnp.max(jnp.abs(diff)))
    cap = 0.1 * float(jnp.max(jnp.abs(ref))) + 1e-3
    assert rel < rel_tol, (name, "rel", rel)
    assert mx < cap, (name, "maxabs", mx, cap)


if __name__ == "__main__":
    key = jax.random.PRNGKey(0)

    def make_case(k, n, c, hw):
        ks = jax.random.split(k, 5)
        x = jax.random.normal(ks[0], (n, c, hw, hw), dtype=jnp.float32)
        w1 = jax.random.normal(ks[1], (c, c, 3, 3), jnp.float32) / (c * 9) ** 0.5
        b1 = jax.random.normal(ks[2], (c,), jnp.float32) * 0.1
        w2 = jax.random.normal(ks[3], (c, c, 5, 5), jnp.float32) / (c * 25) ** 0.5
        b2 = jax.random.normal(ks[4], (c,), jnp.float32) * 0.1
        return x, w1, b1, w2, b2

    k0, k1, k2, k3 = jax.random.split(key, 4)

    # Case A: module-sized toy shapes (batch=2, C=4, 16x16); temb/cemb unused.
    x, w1, b1, w2, b2 = make_case(k0, 2, 4, 16)
    temb = jax.random.normal(jax.random.PRNGKey(1), (2, 32), jnp.float32)
    cemb = jax.random.normal(jax.random.PRNGKey(2), (2, 32), jnp.float32)
    out = jax.block_until_ready(downsample_pallas(x, w1, b1, w2, b2, temb, cemb))
    ref = jax.block_until_ready(_reference(x, w1, b1, w2, b2))
    assert out.shape == (2, 4, 8, 8), out.shape
    _check("A", out, ref)

    # Case B: lane-dense channels + row tiling on the resident-rows path.
    x, w1, b1, w2, b2 = make_case(k1, 1, 128, 16)
    out = jax.block_until_ready(
        downsample_pallas(x, w1, b1, w2, b2, max_rows_per_tile=4))
    _check("B", out, jax.block_until_ready(_reference(x, w1, b1, w2, b2)))

    # Case C: Cout-tiled weights (2 output-channel tiles) + row tiling.
    x, w1, b1, w2, b2 = make_case(k2, 1, 256, 16)
    out = jax.block_until_ready(
        downsample_pallas(x, w1, b1, w2, b2, max_rows_per_tile=4,
                          max_cout_per_tile=128))
    _check("C", out, jax.block_until_ready(_reference(x, w1, b1, w2, b2)))

    # Case D: windowed-rows fallback path (halo-duplicated input).
    x, w1, b1, w2, b2 = make_case(k3, 2, 4, 16)
    out = jax.block_until_ready(
        downsample_pallas(x, w1, b1, w2, b2, max_rows_per_tile=4,
                          force_row_windows=True))
    _check("D", out, jax.block_until_ready(_reference(x, w1, b1, w2, b2)))

    print("KERNEL_OK")
</pallas_src>

<mosaic_0001>
module attributes {stable_mosaic.version = 11 : i64} {
  func.func @_downsample_kernel(%arg0: i32, %arg1: i32, %arg2: i32, %arg3: memref<1x4x10x16x4xbf16, #tpu.memory_space<vmem>>, %arg4: memref<25x4x4xbf16, #tpu.memory_space<vmem>>, %arg5: memref<1x4xf32, #tpu.memory_space<vmem>>, %arg6: memref<1x1x64x4xf32, #tpu.memory_space<vmem>>) attributes {dimension_semantics = [#tpu.dimension_semantics<parallel>, #tpu.dimension_semantics<parallel>, #tpu.dimension_semantics<parallel>], iteration_bounds = array<i64: 2, 1, 1>, scalar_prefetch = 0 : i64, scratch_operands = 0 : i64, tpu.core_type = #tpu.core_type<tc>, window_params = [{transform_indices = @transform_0, window_bounds = array<i64: 1, 4, 10, 16, 4>}, {transform_indices = @transform_1, window_bounds = array<i64: 25, 4, 4>}, {transform_indices = @transform_2, window_bounds = array<i64: 1, 4>}, {transform_indices = @transform_3, window_bounds = array<i64: 1, 1, 64, 4>}]} {
    %c8_i32 = arith.constant 8 : i32
    %0 = arith.muli %arg1, %c8_i32 : i32
    %cst = arith.constant 0.000000e+00 : f32
    %1 = vector.broadcast %cst : f32 to vector<64x4xf32>
    %c0_i32 = arith.constant 0 : i32
    %2 = arith.addi %0, %c0_i32 : i32
    %c0 = arith.constant 0 : index
    %c0_0 = arith.constant 0 : index
    %3 = arith.index_cast %2 : i32 to index
    %c0_1 = arith.constant 0 : index
    %c0_2 = arith.constant 0 : index
    %4 = vector.load %arg3[%c0, %c0_0, %3, %c0_1, %c0_2] : memref<1x4x10x16x4xbf16, #tpu.memory_space<vmem>>, vector<1x1x8x8x4xbf16>
    %5 = vector.shape_cast %4 : vector<1x1x8x8x4xbf16> to vector<8x8x4xbf16>
    %6 = vector.shape_cast %5 : vector<8x8x4xbf16> to vector<64x4xbf16>
    %c0_3 = arith.constant 0 : index
    %c0_4 = arith.constant 0 : index
    %c0_5 = arith.constant 0 : index
    %7 = vector.load %arg4[%c0_3, %c0_4, %c0_5] : memref<25x4x4xbf16, #tpu.memory_space<vmem>>, vector<1x4x4xbf16>
    %8 = vector.shape_cast %7 : vector<1x4x4xbf16> to vector<4x4xbf16>
    %cst_6 = arith.constant dense<0.000000e+00> : vector<64x4xf32>
    %9 = tpu.matmul %6, %8, %cst_6 {dimension_numbers = #tpu.dot_dimension_numbers<[1], [0], [0], [1], [0, 0, 1, 1], [], []>} : vector<64x4xbf16>, vector<4x4xbf16>, vector<64x4xf32> -> vector<64x4xf32>
    %10 = arith.addf %1, %9 : vector<64x4xf32>
    %c0_i32_7 = arith.constant 0 : i32
    %11 = arith.addi %0, %c0_i32_7 : i32
    %c0_8 = arith.constant 0 : index
    %c0_9 = arith.constant 0 : index
    %12 = arith.index_cast %11 : i32 to index
    %c1 = arith.constant 1 : index
    %c0_10 = arith.constant 0 : index
    %13 = vector.load %arg3[%c0_8, %c0_9, %12, %c1, %c0_10] : memref<1x4x10x16x4xbf16, #tpu.memory_space<vmem>>, vector<1x1x8x8x4xbf16>
    %14 = vector.shape_cast %13 : vector<1x1x8x8x4xbf16> to vector<8x8x4xbf16>
    %15 = vector.shape_cast %14 : vector<8x8x4xbf16> to vector<64x4xbf16>
    %c1_11 = arith.constant 1 : index
    %c0_12 = arith.constant 0 : index
    %c0_13 = arith.constant 0 : index
    %16 = vector.load %arg4[%c1_11, %c0_12, %c0_13] : memref<25x4x4xbf16, #tpu.memory_space<vmem>>, vector<1x4x4xbf16>
    %17 = vector.shape_cast %16 : vector<1x4x4xbf16> to vector<4x4xbf16>
    %cst_14 = arith.constant dense<0.000000e+00> : vector<64x4xf32>
    %18 = tpu.matmul %15, %17, %cst_14 {dimension_numbers = #tpu.dot_dimension_numbers<[1], [0], [0], [1], [0, 0, 1, 1], [], []>} : vector<64x4xbf16>, vector<4x4xbf16>, vector<64x4xf32> -> vector<64x4xf32>
    %19 = arith.addf %10, %18 : vector<64x4xf32>
    %c0_i32_15 = arith.constant 0 : i32
    %20 = arith.addi %0, %c0_i32_15 : i32
    %c0_16 = arith.constant 0 : index
    %c0_17 = arith.constant 0 : index
    %21 = arith.index_cast %20 : i32 to index
    %c2 = arith.constant 2 : index
    %c0_18 = arith.constant 0 : index
    %22 = vector.load %arg3[%c0_16, %c0_17, %21, %c2, %c0_18] : memref<1x4x10x16x4xbf16, #tpu.memory_space<vmem>>, vector<1x1x8x8x4xbf16>
    %23 = vector.shape_cast %22 : vector<1x1x8x8x4xbf16> to vector<8x8x4xbf16>
    %24 = vector.shape_cast %23 : vector<8x8x4xbf16> to vector<64x4xbf16>
    %c2_19 = arith.constant 2 : index
    %c0_20 = arith.constant 0 : index
    %c0_21 = arith.constant 0 : index
    %25 = vector.load %arg4[%c2_19, %c0_20, %c0_21] : memref<25x4x4xbf16, #tpu.memory_space<vmem>>, vector<1x4x4xbf16>
    %26 = vector.shape_cast %25 : vector<1x4x4xbf16> to vector<4x4xbf16>
    %cst_22 = arith.constant dense<0.000000e+00> : vector<64x4xf32>
    %27 = tpu.matmul %24, %26, %cst_22 {dimension_numbers = #tpu.dot_dimension_numbers<[1], [0], [0], [1], [0, 0, 1, 1], [], []>} : vector<64x4xbf16>, vector<4x4xbf16>, vector<64x4xf32> -> vector<64x4xf32>
    %28 = arith.addf %19, %27 : vector<64x4xf32>
    %c1_i32 = arith.constant 1 : i32
    %29 = arith.addi %0, %c1_i32 : i32
    %c0_23 = arith.constant 0 : index
    %c0_24 = arith.constant 0 : index
    %30 = arith.index_cast %29 : i32 to index
    %c0_25 = arith.constant 0 : index
    %c0_26 = arith.constant 0 : index
    %31 = vector.load %arg3[%c0_23, %c0_24, %30, %c0_25, %c0_26] : memref<1x4x10x16x4xbf16, #tpu.memory_space<vmem>>, vector<1x1x8x8x4xbf16>
    %32 = vector.shape_cast %31 : vector<1x1x8x8x4xbf16> to vector<8x8x4xbf16>
    %33 = vector.shape_cast %32 : vector<8x8x4xbf16> to vector<64x4xbf16>
    %c3 = arith.constant 3 : index
    %c0_27 = arith.constant 0 : index
    %c0_28 = arith.constant 0 : index
    %34 = vector.load %arg4[%c3, %c0_27, %c0_28] : memref<25x4x4xbf16, #tpu.memory_space<vmem>>, vector<1x4x4xbf16>
    %35 = vector.shape_cast %34 : vector<1x4x4xbf16> to vector<4x4xbf16>
    %cst_29 = arith.constant dense<0.000000e+00> : vector<64x4xf32>
    %36 = tpu.matmul %33, %35, %cst_29 {dimension_numbers = #tpu.dot_dimension_numbers<[1], [0], [0], [1], [0, 0, 1, 1], [], []>} : vector<64x4xbf16>, vector<4x4xbf16>, vector<64x4xf32> -> vector<64x4xf32>
    %37 = arith.addf %28, %36 : vector<64x4xf32>
    %c1_i32_30 = arith.constant 1 : i32
    %38 = arith.addi %0, %c1_i32_30 : i32
    %c0_31 = arith.constant 0 : index
    %c0_32 = arith.constant 0 : index
    %39 = arith.index_cast %38 : i32 to index
    %c1_33 = arith.constant 1 : index
    %c0_34 = arith.constant 0 : index
    %40 = vector.load %arg3[%c0_31, %c0_32, %39, %c1_33, %c0_34] : memref<1x4x10x16x4xbf16, #tpu.memory_space<vmem>>, vector<1x1x8x8x4xbf16>
    %41 = vector.shape_cast %40 : vector<1x1x8x8x4xbf16> to vector<8x8x4xbf16>
    %42 = vector.shape_cast %41 : vector<8x8x4xbf16> to vector<64x4xbf16>
    %c4 = arith.constant 4 : index
    %c0_35 = arith.constant 0 : index
    %c0_36 = arith.constant 0 : index
    %43 = vector.load %arg4[%c4, %c0_35, %c0_36] : memref<25x4x4xbf16, #tpu.memory_space<vmem>>, vector<1x4x4xbf16>
    %44 = vector.shape_cast %43 : vector<1x4x4xbf16> to vector<4x4xbf16>
    %cst_37 = arith.constant dense<0.000000e+00> : vector<64x4xf32>
    %45 = tpu.matmul %42, %44, %cst_37 {dimension_numbers = #tpu.dot_dimension_numbers<[1], [0], [0], [1], [0, 0, 1, 1], [], []>} : vector<64x4xbf16>, vector<4x4xbf16>, vector<64x4xf32> -> vector<64x4xf32>
    %46 = arith.addf %37, %45 : vector<64x4xf32>
    %c1_i32_38 = arith.constant 1 : i32
    %47 = arith.addi %0, %c1_i32_38 : i32
    %c0_39 = arith.constant 0 : index
    %c0_40 = arith.constant 0 : index
    %48 = arith.index_cast %47 : i32 to index
    %c2_41 = arith.constant 2 : index
    %c0_42 = arith.constant 0 : index
    %49 = vector.load %arg3[%c0_39, %c0_40, %48, %c2_41, %c0_42] : memref<1x4x10x16x4xbf16, #tpu.memory_space<vmem>>, vector<1x1x8x8x4xbf16>
    %50 = vector.shape_cast %49 : vector<1x1x8x8x4xbf16> to vector<8x8x4xbf16>
    %51 = vector.shape_cast %50 : vector<8x8x4xbf16> to vector<64x4xbf16>
    %c5 = arith.constant 5 : index
    %c0_43 = arith.constant 0 : index
    %c0_44 = arith.constant 0 : index
    %52 = vector.load %arg4[%c5, %c0_43, %c0_44] : memref<25x4x4xbf16, #tpu.memory_space<vmem>>, vector<1x4x4xbf16>
    %53 = vector.shape_cast %52 : vector<1x4x4xbf16> to vector<4x4xbf16>
    %cst_45 = arith.constant dense<0.000000e+00> : vector<64x4xf32>
    %54 = tpu.matmul %51, %53, %cst_45 {dimension_numbers = #tpu.dot_dimension_numbers<[1], [0], [0], [1], [0, 0, 1, 1], [], []>} : vector<64x4xbf16>, vector<4x4xbf16>, vector<64x4xf32> -> vector<64x4xf32>
    %55 = arith.addf %46, %54 : vector<64x4xf32>
    %c2_i32 = arith.constant 2 : i32
    %56 = arith.addi %0, %c2_i32 : i32
    %c0_46 = arith.constant 0 : index
    %c0_47 = arith.constant 0 : index
    %57 = arith.index_cast %56 : i32 to index
    %c0_48 = arith.constant 0 : index
    %c0_49 = arith.constant 0 : index
    %58 = vector.load %arg3[%c0_46, %c0_47, %57, %c0_48, %c0_49] : memref<1x4x10x16x4xbf16, #tpu.memory_space<vmem>>, vector<1x1x8x8x4xbf16>
    %59 = vector.shape_cast %58 : vector<1x1x8x8x4xbf16> to vector<8x8x4xbf16>
    %60 = vector.shape_cast %59 : vector<8x8x4xbf16> to vector<64x4xbf16>
    %c6 = arith.constant 6 : index
    %c0_50 = arith.constant 0 : index
    %c0_51 = arith.constant 0 : index
    %61 = vector.load %arg4[%c6, %c0_50, %c0_51] : memref<25x4x4xbf16, #tpu.memory_space<vmem>>, vector<1x4x4xbf16>
    %62 = vector.shape_cast %61 : vector<1x4x4xbf16> to vector<4x4xbf16>
    %cst_52 = arith.constant dense<0.000000e+00> : vector<64x4xf32>
    %63 = tpu.matmul %60, %62, %cst_52 {dimension_numbers = #tpu.dot_dimension_numbers<[1], [0], [0], [1], [0, 0, 1, 1], [], []>} : vector<64x4xbf16>, vector<4x4xbf16>, vector<64x4xf32> -> vector<64x4xf32>
    %64 = arith.addf %55, %63 : vector<64x4xf32>
    %c2_i32_53 = arith.constant 2 : i32
    %65 = arith.addi %0, %c2_i32_53 : i32
    %c0_54 = arith.constant 0 : index
    %c0_55 = arith.constant 0 : index
    %66 = arith.index_cast %65 : i32 to index
    %c1_56 = arith.constant 1 : index
    %c0_57 = arith.constant 0 : index
    %67 = vector.load %arg3[%c0_54, %c0_55, %66, %c1_56, %c0_57] : memref<1x4x10x16x4xbf16, #tpu.memory_space<vmem>>, vector<1x1x8x8x4xbf16>
    %68 = vector.shape_cast %67 : vector<1x1x8x8x4xbf16> to vector<8x8x4xbf16>
    %69 = vector.shape_cast %68 : vector<8x8x4xbf16> to vector<64x4xbf16>
    %c7 = arith.constant 7 : index
    %c0_58 = arith.constant 0 : index
    %c0_59 = arith.constant 0 : index
    %70 = vector.load %arg4[%c7, %c0_58, %c0_59] : memref<25x4x4xbf16, #tpu.memory_space<vmem>>, vector<1x4x4xbf16>
    %71 = vector.shape_cast %70 : vector<1x4x4xbf16> to vector<4x4xbf16>
    %cst_60 = arith.constant dense<0.000000e+00> : vector<64x4xf32>
    %72 = tpu.matmul %69, %71, %cst_60 {dimension_numbers = #tpu.dot_dimension_numbers<[1], [0], [0], [1], [0, 0, 1, 1], [], []>} : vector<64x4xbf16>, vector<4x4xbf16>, vector<64x4xf32> -> vector<64x4xf32>
    %73 = arith.addf %64, %72 : vector<64x4xf32>
    %c2_i32_61 = arith.constant 2 : i32
    %74 = arith.addi %0, %c2_i32_61 : i32
    %c0_62 = arith.constant 0 : index
    %c0_63 = arith.constant 0 : index
    %75 = arith.index_cast %74 : i32 to index
    %c2_64 = arith.constant 2 : index
    %c0_65 = arith.constant 0 : index
    %76 = vector.load %arg3[%c0_62, %c0_63, %75, %c2_64, %c0_65] : memref<1x4x10x16x4xbf16, #tpu.memory_space<vmem>>, vector<1x1x8x8x4xbf16>
    %77 = vector.shape_cast %76 : vector<1x1x8x8x4xbf16> to vector<8x8x4xbf16>
    %78 = vector.shape_cast %77 : vector<8x8x4xbf16> to vector<64x4xbf16>
    %c8 = arith.constant 8 : index
    %c0_66 = arith.constant 0 : index
    %c0_67 = arith.constant 0 : index
    %79 = vector.load %arg4[%c8, %c0_66, %c0_67] : memref<25x4x4xbf16, #tpu.memory_space<vmem>>, vector<1x4x4xbf16>
    %80 = vector.shape_cast %79 : vector<1x4x4xbf16> to vector<4x4xbf16>
    %cst_68 = arith.constant dense<0.000000e+00> : vector<64x4xf32>
    %81 = tpu.matmul %78, %80, %cst_68 {dimension_numbers = #tpu.dot_dimension_numbers<[1], [0], [0], [1], [0, 0, 1, 1], [], []>} : vector<64x4xbf16>, vector<4x4xbf16>, vector<64x4xf32> -> vector<64x4xf32>
    %82 = arith.addf %73, %81 : vector<64x4xf32>
    %c0_i32_69 = arith.constant 0 : i32
    %83 = arith.addi %0, %c0_i32_69 : i32
    %c0_70 = arith.constant 0 : index
    %c1_71 = arith.constant 1 : index
    %84 = arith.index_cast %83 : i32 to index
    %c0_72 = arith.constant 0 : index
    %c0_73 = arith.constant 0 : index
    %85 = vector.load %arg3[%c0_70, %c1_71, %84, %c0_72, %c0_73] : memref<1x4x10x16x4xbf16, #tpu.memory_space<vmem>>, vector<1x1x8x8x4xbf16>
    %86 = vector.shape_cast %85 : vector<1x1x8x8x4xbf16> to vector<8x8x4xbf16>
    %87 = vector.shape_cast %86 : vector<8x8x4xbf16> to vector<64x4xbf16>
    %c9 = arith.constant 9 : index
    %c0_74 = arith.constant 0 : index
    %c0_75 = arith.constant 0 : index
    %88 = vector.load %arg4[%c9, %c0_74, %c0_75] : memref<25x4x4xbf16, #tpu.memory_space<vmem>>, vector<1x4x4xbf16>
    %89 = vector.shape_cast %88 : vector<1x4x4xbf16> to vector<4x4xbf16>
    %cst_76 = arith.constant dense<0.000000e+00> : vector<64x4xf32>
    %90 = tpu.matmul %87, %89, %cst_76 {dimension_numbers = #tpu.dot_dimension_numbers<[1], [0], [0], [1], [0, 0, 1, 1], [], []>} : vector<64x4xbf16>, vector<4x4xbf16>, vector<64x4xf32> -> vector<64x4xf32>
    %91 = arith.addf %82, %90 : vector<64x4xf32>
    %c0_i32_77 = arith.constant 0 : i32
    %92 = arith.addi %0, %c0_i32_77 : i32
    %c0_78 = arith.constant 0 : index
    %c1_79 = arith.constant 1 : index
    %93 = arith.index_cast %92 : i32 to index
    %c1_80 = arith.constant 1 : index
    %c0_81 = arith.constant 0 : index
    %94 = vector.load %arg3[%c0_78, %c1_79, %93, %c1_80, %c0_81] : memref<1x4x10x16x4xbf16, #tpu.memory_space<vmem>>, vector<1x1x8x8x4xbf16>
    %95 = vector.shape_cast %94 : vector<1x1x8x8x4xbf16> to vector<8x8x4xbf16>
    %96 = vector.shape_cast %95 : vector<8x8x4xbf16> to vector<64x4xbf16>
    %c10 = arith.constant 10 : index
    %c0_82 = arith.constant 0 : index
    %c0_83 = arith.constant 0 : index
    %97 = vector.load %arg4[%c10, %c0_82, %c0_83] : memref<25x4x4xbf16, #tpu.memory_space<vmem>>, vector<1x4x4xbf16>
    %98 = vector.shape_cast %97 : vector<1x4x4xbf16> to vector<4x4xbf16>
    %cst_84 = arith.constant dense<0.000000e+00> : vector<64x4xf32>
    %99 = tpu.matmul %96, %98, %cst_84 {dimension_numbers = #tpu.dot_dimension_numbers<[1], [0], [0], [1], [0, 0, 1, 1], [], []>} : vector<64x4xbf16>, vector<4x4xbf16>, vector<64x4xf32> -> vector<64x4xf32>
    %100 = arith.addf %91, %99 : vector<64x4xf32>
    %c1_i32_85 = arith.constant 1 : i32
    %101 = arith.addi %0, %c1_i32_85 : i32
    %c0_86 = arith.constant 0 : index
    %c1_87 = arith.constant 1 : index
    %102 = arith.index_cast %101 : i32 to index
    %c0_88 = arith.constant 0 : index
    %c0_89 = arith.constant 0 : index
    %103 = vector.load %arg3[%c0_86, %c1_87, %102, %c0_88, %c0_89] : memref<1x4x10x16x4xbf16, #tpu.memory_space<vmem>>, vector<1x1x8x8x4xbf16>
    %104 = vector.shape_cast %103 : vector<1x1x8x8x4xbf16> to vector<8x8x4xbf16>
    %105 = vector.shape_cast %104 : vector<8x8x4xbf16> to vector<64x4xbf16>
    %c11 = arith.constant 11 : index
    %c0_90 = arith.constant 0 : index
    %c0_91 = arith.constant 0 : index
    %106 = vector.load %arg4[%c11, %c0_90, %c0_91] : memref<25x4x4xbf16, #tpu.memory_space<vmem>>, vector<1x4x4xbf16>
    %107 = vector.shape_cast %106 : vector<1x4x4xbf16> to vector<4x4xbf16>
    %cst_92 = arith.constant dense<0.000000e+00> : vector<64x4xf32>
    %108 = tpu.matmul %105, %107, %cst_92 {dimension_numbers = #tpu.dot_dimension_numbers<[1], [0], [0], [1], [0, 0, 1, 1], [], []>} : vector<64x4xbf16>, vector<4x4xbf16>, vector<64x4xf32> -> vector<64x4xf32>
    %109 = arith.addf %100, %108 : vector<64x4xf32>
    %c1_i32_93 = arith.constant 1 : i32
    %110 = arith.addi %0, %c1_i32_93 : i32
    %c0_94 = arith.constant 0 : index
    %c1_95 = arith.constant 1 : index
    %111 = arith.index_cast %110 : i32 to index
    %c1_96 = arith.constant 1 : index
    %c0_97 = arith.constant 0 : index
    %112 = vector.load %arg3[%c0_94, %c1_95, %111, %c1_96, %c0_97] : memref<1x4x10x16x4xbf16, #tpu.memory_space<vmem>>, vector<1x1x8x8x4xbf16>
    %113 = vector.shape_cast %112 : vector<1x1x8x8x4xbf16> to vector<8x8x4xbf16>
    %114 = vector.shape_cast %113 : vector<8x8x4xbf16> to vector<64x4xbf16>
    %c12 = arith.constant 12 : index
    %c0_98 = arith.constant 0 : index
    %c0_99 = arith.constant 0 : index
    %115 = vector.load %arg4[%c12, %c0_98, %c0_99] : memref<25x4x4xbf16, #tpu.memory_space<vmem>>, vector<1x4x4xbf16>
    %116 = vector.shape_cast %115 : vector<1x4x4xbf16> to vector<4x4xbf16>
    %cst_100 = arith.constant dense<0.000000e+00> : vector<64x4xf32>
    %117 = tpu.matmul %114, %116, %cst_100 {dimension_numbers = #tpu.dot_dimension_numbers<[1], [0], [0], [1], [0, 0, 1, 1], [], []>} : vector<64x4xbf16>, vector<4x4xbf16>, vector<64x4xf32> -> vector<64x4xf32>
    %118 = arith.addf %109, %117 : vector<64x4xf32>
    %c2_i32_101 = arith.constant 2 : i32
    %119 = arith.addi %0, %c2_i32_101 : i32
    %c0_102 = arith.constant 0 : index
    %c1_103 = arith.constant 1 : index
    %120 = arith.index_cast %119 : i32 to index
    %c0_104 = arith.constant 0 : index
    %c0_105 = arith.constant 0 : index
    %121 = vector.load %arg3[%c0_102, %c1_103, %120, %c0_104, %c0_105] : memref<1x4x10x16x4xbf16, #tpu.memory_space<vmem>>, vector<1x1x8x8x4xbf16>
    %122 = vector.shape_cast %121 : vector<1x1x8x8x4xbf16> to vector<8x8x4xbf16>
    %123 = vector.shape_cast %122 : vector<8x8x4xbf16> to vector<64x4xbf16>
    %c13 = arith.constant 13 : index
    %c0_106 = arith.constant 0 : index
    %c0_107 = arith.constant 0 : index
    %124 = vector.load %arg4[%c13, %c0_106, %c0_107] : memref<25x4x4xbf16, #tpu.memory_space<vmem>>, vector<1x4x4xbf16>
    %125 = vector.shape_cast %124 : vector<1x4x4xbf16> to vector<4x4xbf16>
    %cst_108 = arith.constant dense<0.000000e+00> : vector<64x4xf32>
    %126 = tpu.matmul %123, %125, %cst_108 {dimension_numbers = #tpu.dot_dimension_numbers<[1], [0], [0], [1], [0, 0, 1, 1], [], []>} : vector<64x4xbf16>, vector<4x4xbf16>, vector<64x4xf32> -> vector<64x4xf32>
    %127 = arith.addf %118, %126 : vector<64x4xf32>
    %c2_i32_109 = arith.constant 2 : i32
    %128 = arith.addi %0, %c2_i32_109 : i32
    %c0_110 = arith.constant 0 : index
    %c1_111 = arith.constant 1 : index
    %129 = arith.index_cast %128 : i32 to index
    %c1_112 = arith.constant 1 : index
    %c0_113 = arith.constant 0 : index
    %130 = vector.load %arg3[%c0_110, %c1_111, %129, %c1_112, %c0_113] : memref<1x4x10x16x4xbf16, #tpu.memory_space<vmem>>, vector<1x1x8x8x4xbf16>
    %131 = vector.shape_cast %130 : vector<1x1x8x8x4xbf16> to vector<8x8x4xbf16>
    %132 = vector.shape_cast %131 : vector<8x8x4xbf16> to vector<64x4xbf16>
    %c14 = arith.constant 14 : index
    %c0_114 = arith.constant 0 : index
    %c0_115 = arith.constant 0 : index
    %133 = vector.load %arg4[%c14, %c0_114, %c0_115] : memref<25x4x4xbf16, #tpu.memory_space<vmem>>, vector<1x4x4xbf16>
    %134 = vector.shape_cast %133 : vector<1x4x4xbf16> to vector<4x4xbf16>
    %cst_116 = arith.constant dense<0.000000e+00> : vector<64x4xf32>
    %135 = tpu.matmul %132, %134, %cst_116 {dimension_numbers = #tpu.dot_dimension_numbers<[1], [0], [0], [1], [0, 0, 1, 1], [], []>} : vector<64x4xbf16>, vector<4x4xbf16>, vector<64x4xf32> -> vector<64x4xf32>
    %136 = arith.addf %127, %135 : vector<64x4xf32>
    %c0_i32_117 = arith.constant 0 : i32
    %137 = arith.addi %0, %c0_i32_117 : i32
    %c0_118 = arith.constant 0 : index
    %c2_119 = arith.constant 2 : index
    %138 = arith.index_cast %137 : i32 to index
    %c0_120 = arith.constant 0 : index
    %c0_121 = arith.constant 0 : index
    %139 = vector.load %arg3[%c0_118, %c2_119, %138, %c0_120, %c0_121] : memref<1x4x10x16x4xbf16, #tpu.memory_space<vmem>>, vector<1x1x8x8x4xbf16>
    %140 = vector.shape_cast %139 : vector<1x1x8x8x4xbf16> to vector<8x8x4xbf16>
    %141 = vector.shape_cast %140 : vector<8x8x4xbf16> to vector<64x4xbf16>
    %c15 = arith.constant 15 : index
    %c0_122 = arith.constant 0 : index
    %c0_123 = arith.constant 0 : index
    %142 = vector.load %arg4[%c15, %c0_122, %c0_123] : memref<25x4x4xbf16, #tpu.memory_space<vmem>>, vector<1x4x4xbf16>
    %143 = vector.shape_cast %142 : vector<1x4x4xbf16> to vector<4x4xbf16>
    %cst_124 = arith.constant dense<0.000000e+00> : vector<64x4xf32>
    %144 = tpu.matmul %141, %143, %cst_124 {dimension_numbers = #tpu.dot_dimension_numbers<[1], [0], [0], [1], [0, 0, 1, 1], [], []>} : vector<64x4xbf16>, vector<4x4xbf16>, vector<64x4xf32> -> vector<64x4xf32>
    %145 = arith.addf %136, %144 : vector<64x4xf32>
    %c0_i32_125 = arith.constant 0 : i32
    %146 = arith.addi %0, %c0_i32_125 : i32
    %c0_126 = arith.constant 0 : index
    %c2_127 = arith.constant 2 : index
    %147 = arith.index_cast %146 : i32 to index
    %c1_128 = arith.constant 1 : index
    %c0_129 = arith.constant 0 : index
    %148 = vector.load %arg3[%c0_126, %c2_127, %147, %c1_128, %c0_129] : memref<1x4x10x16x4xbf16, #tpu.memory_space<vmem>>, vector<1x1x8x8x4xbf16>
    %149 = vector.shape_cast %148 : vector<1x1x8x8x4xbf16> to vector<8x8x4xbf16>
    %150 = vector.shape_cast %149 : vector<8x8x4xbf16> to vector<64x4xbf16>
    %c16 = arith.constant 16 : index
    %c0_130 = arith.constant 0 : index
    %c0_131 = arith.constant 0 : index
    %151 = vector.load %arg4[%c16, %c0_130, %c0_131] : memref<25x4x4xbf16, #tpu.memory_space<vmem>>, vector<1x4x4xbf16>
    %152 = vector.shape_cast %151 : vector<1x4x4xbf16> to vector<4x4xbf16>
    %cst_132 = arith.constant dense<0.000000e+00> : vector<64x4xf32>
    %153 = tpu.matmul %150, %152, %cst_132 {dimension_numbers = #tpu.dot_dimension_numbers<[1], [0], [0], [1], [0, 0, 1, 1], [], []>} : vector<64x4xbf16>, vector<4x4xbf16>, vector<64x4xf32> -> vector<64x4xf32>
    %154 = arith.addf %145, %153 : vector<64x4xf32>
    %c0_i32_133 = arith.constant 0 : i32
    %155 = arith.addi %0, %c0_i32_133 : i32
    %c0_134 = arith.constant 0 : index
    %c2_135 = arith.constant 2 : index
    %156 = arith.index_cast %155 : i32 to index
    %c2_136 = arith.constant 2 : index
    %c0_137 = arith.constant 0 : index
    %157 = vector.load %arg3[%c0_134, %c2_135, %156, %c2_136, %c0_137] : memref<1x4x10x16x4xbf16, #tpu.memory_space<vmem>>, vector<1x1x8x8x4xbf16>
    %158 = vector.shape_cast %157 : vector<1x1x8x8x4xbf16> to vector<8x8x4xbf16>
    %159 = vector.shape_cast %158 : vector<8x8x4xbf16> to vector<64x4xbf16>
    %c17 = arith.constant 17 : index
    %c0_138 = arith.constant 0 : index
    %c0_139 = arith.constant 0 : index
    %160 = vector.load %arg4[%c17, %c0_138, %c0_139] : memref<25x4x4xbf16, #tpu.memory_space<vmem>>, vector<1x4x4xbf16>
    %161 = vector.shape_cast %160 : vector<1x4x4xbf16> to vector<4x4xbf16>
    %cst_140 = arith.constant dense<0.000000e+00> : vector<64x4xf32>
    %162 = tpu.matmul %159, %161, %cst_140 {dimension_numbers = #tpu.dot_dimension_numbers<[1], [0], [0], [1], [0, 0, 1, 1], [], []>} : vector<64x4xbf16>, vector<4x4xbf16>, vector<64x4xf32> -> vector<64x4xf32>
    %163 = arith.addf %154, %162 : vector<64x4xf32>
    %c1_i32_141 = arith.constant 1 : i32
    %164 = arith.addi %0, %c1_i32_141 : i32
    %c0_142 = arith.constant 0 : index
    %c2_143 = arith.constant 2 : index
    %165 = arith.index_cast %164 : i32 to index
    %c0_144 = arith.constant 0 : index
    %c0_145 = arith.constant 0 : index
    %166 = vector.load %arg3[%c0_142, %c2_143, %165, %c0_144, %c0_145] : memref<1x4x10x16x4xbf16, #tpu.memory_space<vmem>>, vector<1x1x8x8x4xbf16>
    %167 = vector.shape_cast %166 : vector<1x1x8x8x4xbf16> to vector<8x8x4xbf16>
    %168 = vector.shape_cast %167 : vector<8x8x4xbf16> to vector<64x4xbf16>
    %c18 = arith.constant 18 : index
    %c0_146 = arith.constant 0 : index
    %c0_147 = arith.constant 0 : index
    %169 = vector.load %arg4[%c18, %c0_146, %c0_147] : memref<25x4x4xbf16, #tpu.memory_space<vmem>>, vector<1x4x4xbf16>
    %170 = vector.shape_cast %169 : vector<1x4x4xbf16> to vector<4x4xbf16>
    %cst_148 = arith.constant dense<0.000000e+00> : vector<64x4xf32>
    %171 = tpu.matmul %168, %170, %cst_148 {dimension_numbers = #tpu.dot_dimension_numbers<[1], [0], [0], [1], [0, 0, 1, 1], [], []>} : vector<64x4xbf16>, vector<4x4xbf16>, vector<64x4xf32> -> vector<64x4xf32>
    %172 = arith.addf %163, %171 : vector<64x4xf32>
    %c1_i32_149 = arith.constant 1 : i32
    %173 = arith.addi %0, %c1_i32_149 : i32
    %c0_150 = arith.constant 0 : index
    %c2_151 = arith.constant 2 : index
    %174 = arith.index_cast %173 : i32 to index
    %c1_152 = arith.constant 1 : index
    %c0_153 = arith.constant 0 : index
    %175 = vector.load %arg3[%c0_150, %c2_151, %174, %c1_152, %c0_153] : memref<1x4x10x16x4xbf16, #tpu.memory_space<vmem>>, vector<1x1x8x8x4xbf16>
    %176 = vector.shape_cast %175 : vector<1x1x8x8x4xbf16> to vector<8x8x4xbf16>
    %177 = vector.shape_cast %176 : vector<8x8x4xbf16> to vector<64x4xbf16>
    %c19 = arith.constant 19 : index
    %c0_154 = arith.constant 0 : index
    %c0_155 = arith.constant 0 : index
    %178 = vector.load %arg4[%c19, %c0_154, %c0_155] : memref<25x4x4xbf16, #tpu.memory_space<vmem>>, vector<1x4x4xbf16>
    %179 = vector.shape_cast %178 : vector<1x4x4xbf16> to vector<4x4xbf16>
    %cst_156 = arith.constant dense<0.000000e+00> : vector<64x4xf32>
    %180 = tpu.matmul %177, %179, %cst_156 {dimension_numbers = #tpu.dot_dimension_numbers<[1], [0], [0], [1], [0, 0, 1, 1], [], []>} : vector<64x4xbf16>, vector<4x4xbf16>, vector<64x4xf32> -> vector<64x4xf32>
    %181 = arith.addf %172, %180 : vector<64x4xf32>
    %c1_i32_157 = arith.constant 1 : i32
    %182 = arith.addi %0, %c1_i32_157 : i32
    %c0_158 = arith.constant 0 : index
    %c2_159 = arith.constant 2 : index
    %183 = arith.index_cast %182 : i32 to index
    %c2_160 = arith.constant 2 : index
    %c0_161 = arith.constant 0 : index
    %184 = vector.load %arg3[%c0_158, %c2_159, %183, %c2_160, %c0_161] : memref<1x4x10x16x4xbf16, #tpu.memory_space<vmem>>, vector<1x1x8x8x4xbf16>
    %185 = vector.shape_cast %184 : vector<1x1x8x8x4xbf16> to vector<8x8x4xbf16>
    %186 = vector.shape_cast %185 : vector<8x8x4xbf16> to vector<64x4xbf16>
    %c20 = arith.constant 20 : index
    %c0_162 = arith.constant 0 : index
    %c0_163 = arith.constant 0 : index
    %187 = vector.load %arg4[%c20, %c0_162, %c0_163] : memref<25x4x4xbf16, #tpu.memory_space<vmem>>, vector<1x4x4xbf16>
    %188 = vector.shape_cast %187 : vector<1x4x4xbf16> to vector<4x4xbf16>
    %cst_164 = arith.constant dense<0.000000e+00> : vector<64x4xf32>
    %189 = tpu.matmul %186, %188, %cst_164 {dimension_numbers = #tpu.dot_dimension_numbers<[1], [0], [0], [1], [0, 0, 1, 1], [], []>} : vector<64x4xbf16>, vector<4x4xbf16>, vector<64x4xf32> -> vector<64x4xf32>
    %190 = arith.addf %181, %189 : vector<64x4xf32>
    %c0_i32_165 = arith.constant 0 : i32
    %191 = arith.addi %0, %c0_i32_165 : i32
    %c0_166 = arith.constant 0 : index
    %c3_167 = arith.constant 3 : index
    %192 = arith.index_cast %191 : i32 to index
    %c0_168 = arith.constant 0 : index
    %c0_169 = arith.constant 0 : index
    %193 = vector.load %arg3[%c0_166, %c3_167, %192, %c0_168, %c0_169] : memref<1x4x10x16x4xbf16, #tpu.memory_space<vmem>>, vector<1x1x8x8x4xbf16>
    %194 = vector.shape_cast %193 : vector<1x1x8x8x4xbf16> to vector<8x8x4xbf16>
    %195 = vector.shape_cast %194 : vector<8x8x4xbf16> to vector<64x4xbf16>
    %c21 = arith.constant 21 : index
    %c0_170 = arith.constant 0 : index
    %c0_171 = arith.constant 0 : index
    %196 = vector.load %arg4[%c21, %c0_170, %c0_171] : memref<25x4x4xbf16, #tpu.memory_space<vmem>>, vector<1x4x4xbf16>
    %197 = vector.shape_cast %196 : vector<1x4x4xbf16> to vector<4x4xbf16>
    %cst_172 = arith.constant dense<0.000000e+00> : vector<64x4xf32>
    %198 = tpu.matmul %195, %197, %cst_172 {dimension_numbers = #tpu.dot_dimension_numbers<[1], [0], [0], [1], [0, 0, 1, 1], [], []>} : vector<64x4xbf16>, vector<4x4xbf16>, vector<64x4xf32> -> vector<64x4xf32>
    %199 = arith.addf %190, %198 : vector<64x4xf32>
    %c0_i32_173 = arith.constant 0 : i32
    %200 = arith.addi %0, %c0_i32_173 : i32
    %c0_174 = arith.constant 0 : index
    %c3_175 = arith.constant 3 : index
    %201 = arith.index_cast %200 : i32 to index
    %c1_176 = arith.constant 1 : index
    %c0_177 = arith.constant 0 : index
    %202 = vector.load %arg3[%c0_174, %c3_175, %201, %c1_176, %c0_177] : memref<1x4x10x16x4xbf16, #tpu.memory_space<vmem>>, vector<1x1x8x8x4xbf16>
    %203 = vector.shape_cast %202 : vector<1x1x8x8x4xbf16> to vector<8x8x4xbf16>
    %204 = vector.shape_cast %203 : vector<8x8x4xbf16> to vector<64x4xbf16>
    %c22 = arith.constant 22 : index
    %c0_178 = arith.constant 0 : index
    %c0_179 = arith.constant 0 : index
    %205 = vector.load %arg4[%c22, %c0_178, %c0_179] : memref<25x4x4xbf16, #tpu.memory_space<vmem>>, vector<1x4x4xbf16>
    %206 = vector.shape_cast %205 : vector<1x4x4xbf16> to vector<4x4xbf16>
    %cst_180 = arith.constant dense<0.000000e+00> : vector<64x4xf32>
    %207 = tpu.matmul %204, %206, %cst_180 {dimension_numbers = #tpu.dot_dimension_numbers<[1], [0], [0], [1], [0, 0, 1, 1], [], []>} : vector<64x4xbf16>, vector<4x4xbf16>, vector<64x4xf32> -> vector<64x4xf32>
    %208 = arith.addf %199, %207 : vector<64x4xf32>
    %c1_i32_181 = arith.constant 1 : i32
    %209 = arith.addi %0, %c1_i32_181 : i32
    %c0_182 = arith.constant 0 : index
    %c3_183 = arith.constant 3 : index
    %210 = arith.index_cast %209 : i32 to index
    %c0_184 = arith.constant 0 : index
    %c0_185 = arith.constant 0 : index
    %211 = vector.load %arg3[%c0_182, %c3_183, %210, %c0_184, %c0_185] : memref<1x4x10x16x4xbf16, #tpu.memory_space<vmem>>, vector<1x1x8x8x4xbf16>
    %212 = vector.shape_cast %211 : vector<1x1x8x8x4xbf16> to vector<8x8x4xbf16>
    %213 = vector.shape_cast %212 : vector<8x8x4xbf16> to vector<64x4xbf16>
    %c23 = arith.constant 23 : index
    %c0_186 = arith.constant 0 : index
    %c0_187 = arith.constant 0 : index
    %214 = vector.load %arg4[%c23, %c0_186, %c0_187] : memref<25x4x4xbf16, #tpu.memory_space<vmem>>, vector<1x4x4xbf16>
    %215 = vector.shape_cast %214 : vector<1x4x4xbf16> to vector<4x4xbf16>
    %cst_188 = arith.constant dense<0.000000e+00> : vector<64x4xf32>
    %216 = tpu.matmul %213, %215, %cst_188 {dimension_numbers = #tpu.dot_dimension_numbers<[1], [0], [0], [1], [0, 0, 1, 1], [], []>} : vector<64x4xbf16>, vector<4x4xbf16>, vector<64x4xf32> -> vector<64x4xf32>
    %217 = arith.addf %208, %216 : vector<64x4xf32>
    %c1_i32_189 = arith.constant 1 : i32
    %218 = arith.addi %0, %c1_i32_189 : i32
    %c0_190 = arith.constant 0 : index
    %c3_191 = arith.constant 3 : index
    %219 = arith.index_cast %218 : i32 to index
    %c1_192 = arith.constant 1 : index
    %c0_193 = arith.constant 0 : index
    %220 = vector.load %arg3[%c0_190, %c3_191, %219, %c1_192, %c0_193] : memref<1x4x10x16x4xbf16, #tpu.memory_space<vmem>>, vector<1x1x8x8x4xbf16>
    %221 = vector.shape_cast %220 : vector<1x1x8x8x4xbf16> to vector<8x8x4xbf16>
    %222 = vector.shape_cast %221 : vector<8x8x4xbf16> to vector<64x4xbf16>
    %c24 = arith.constant 24 : index
    %c0_194 = arith.constant 0 : index
    %c0_195 = arith.constant 0 : index
    %223 = vector.load %arg4[%c24, %c0_194, %c0_195] : memref<25x4x4xbf16, #tpu.memory_space<vmem>>, vector<1x4x4xbf16>
    %224 = vector.shape_cast %223 : vector<1x4x4xbf16> to vector<4x4xbf16>
    %cst_196 = arith.constant dense<0.000000e+00> : vector<64x4xf32>
    %225 = tpu.matmul %222, %224, %cst_196 {dimension_numbers = #tpu.dot_dimension_numbers<[1], [0], [0], [1], [0, 0, 1, 1], [], []>} : vector<64x4xbf16>, vector<4x4xbf16>, vector<64x4xf32> -> vector<64x4xf32>
    %226 = arith.addf %217, %225 : vector<64x4xf32>
    %c0_197 = arith.constant 0 : index
    %c0_198 = arith.constant 0 : index
    %227 = vector.load %arg5[%c0_197, %c0_198] : memref<1x4xf32, #tpu.memory_space<vmem>>, vector<1x4xf32>
    %228 = vector.broadcast %227 : vector<1x4xf32> to vector<64x4xf32>
    %229 = arith.addf %226, %228 : vector<64x4xf32>
    %c0_199 = arith.constant 0 : index
    %c0_200 = arith.constant 0 : index
    %c0_201 = arith.constant 0 : index
    %c0_202 = arith.constant 0 : index
    %230 = vector.load %arg6[%c0_199, %c0_200, %c0_201, %c0_202] : memref<1x1x64x4xf32, #tpu.memory_space<vmem>>, vector<1x1x64x4xf32>
    %231 = vector.shape_cast %230 : vector<1x1x64x4xf32> to vector<64x4xf32>
    %232 = vector.shape_cast %229 : vector<64x4xf32> to vector<1x1x64x4xf32>
    tpu.vector_store %arg6[%c0_199, %c0_200, %c0_201, %c0_202], %232 {strides = array<i32>} : memref<1x1x64x4xf32, #tpu.memory_space<vmem>>, vector<1x1x64x4xf32>,
    return
  }
  func.func @transform_0(%arg0: i32, %arg1: i32, %arg2: i32) -> (i32, i32, i32, i32, i32) {
    %c0_i32 = arith.constant 0 : i32
    %c0_i32_0 = arith.constant 0 : i32
    %c0_i32_1 = arith.constant 0 : i32
    %c0_i32_2 = arith.constant 0 : i32
    %c0_i32_3 = arith.constant 0 : i32
    return %arg0, %c0_i32, %c0_i32_0, %c0_i32_1, %c0_i32_2 : i32, i32, i32, i32, i32
  }
  func.func @transform_1(%arg0: i32, %arg1: i32, %arg2: i32) -> (i32, i32, i32) {
    %c0_i32 = arith.constant 0 : i32
    %c0_i32_0 = arith.constant 0 : i32
    %c0_i32_1 = arith.constant 0 : i32
    return %c0_i32, %c0_i32_0, %arg2 : i32, i32, i32
  }
  func.func @transform_2(%arg0: i32, %arg1: i32, %arg2: i32) -> (i32, i32) {
    %c0_i32 = arith.constant 0 : i32
    %c0_i32_0 = arith.constant 0 : i32
    return %c0_i32, %arg2 : i32, i32
  }
  func.func @transform_3(%arg0: i32, %arg1: i32, %arg2: i32) -> (i32, i32, i32, i32) {
    %c0_i32 = arith.constant 0 : i32
    %c0_i32_0 = arith.constant 0 : i32
    return %arg0, %arg1, %c0_i32, %arg2 : i32, i32, i32, i32
  }
}

</mosaic_0001>

<bundles_post_ra>
// kernel: tpu_custom_call.1
= control target key start
LH: loop header
LB: loop body
LE: loop exit
PB: predicated region body
PF: predicated region fallthrough
CT: control target
= control target key end

     0   :  { %s5946_s12 = smov 0   ;;  %s5948_s13 = smov 0   ;;  %s7044_s0 = inlined_call_operand.vmem [shape: bf16[2,4,10,16,4], index: 0, kind: input, shape index: {}]   ;;  %s7045_s1 = inlined_call_operand.vmem [shape: bf16[25,4,4], index: 1, kind: input, shape index: {}]   ;;  %s7046_s2 = inlined_call_operand.vmem [shape: f32[1,4], index: 2, kind: input, shape index: {}]   ;;  %s7047_s3 = inlined_call_operand.vmem [shape: f32[2,1,64,4], index: 3, kind: output, shape index: {}]  }
   0x1   :  { %s5950_s14 = smov 0  }
   0x2 LB: > { %s32_s15 = sadd.s32 1, %s5920_s13  ;;  %p4721_p0 = scmp.ge.s32.totalorder %s5924_s14, 1  ;;  %s5924_s14 = sphi %s5950_s14, %s13_s14   ;;  %s5920_s13 = sphi %s5948_s13, %s7053_s13   ;;  %s5916_s12 = sphi %s5946_s12, %s7052_s12  }
   0x3   : > { %p34_p1 = scmp.ge.s32.totalorder %s32_s15, 2  ;;  %p177_p2 = scmp.lt.s32.totalorder %s5924_s14, 3 }
   0x5   : > { %s7055_s15 = smov (%p34_p1, %s32_s15), 0  ;;  %p178_p3 = pnand %p4721_p0, %p177_p2 }
   0x6   : > { %v4725_v0 = vld [vmem:[%s7045_s1 + $0x2] sm:$0x3] (!%p178_p3)  ;;  %vm403_vm0 = vcmask (!%p178_p3), 1041408   ;;  %v4968_v1 = vld [vmem:[%s7045_s1 + $0x18] sm:$0x3] (!%p178_p3)  ;;  %p215_p4 = scmp.lt.s32.totalorder (!%p178_p3), %s5916_s12, 1 }
   0x7   : > { %181 = sbr.rel (%p178_p3) target bundleno = 476 (0x1dc), region = 32  ;;  %5810 = vmatprep.subr.msk.bf16.mxu1 (!%p178_p3), %vm403_vm0, %v4725_v0  ;;  %5822 = vmatprep.subr.msk.bf16.mxu0 (!%p178_p3), %vm403_vm0, %v4968_v1  ;;  %v405_v2 = vsel (!%p178_p3), %vm403_vm0, %v4725_v0, 0  ;;  %v5974_v3 = vsel (!%p178_p3), %vm403_vm0, %v4968_v1, 0  ;;  %v252_v4 = vld [vmem:[%s7045_s1] sm:$0x3] (!%p178_p3)  ;;  %vm390_vm3 = vcmask (!%p178_p3), 31744  }
   0x8   : > { %5367 = vmatpush3.bf16.msra.mxu1 (!%p178_p3), %v405_v2  ;;  %5487 = vmatpush3.bf16.msra.mxu0 (!%p178_p3), %v5974_v3  ;;  %v4985_v5 = vld [vmem:[%s7045_s1 + $0x1a] sm:$0x3] (!%p178_p3)  ;;  %v5990_v6 = vld [vmem:[%s7045_s1 + $0x1c] sm:$0x3] (!%p178_p3)  ;;  %vm261_vm1 = vsmask.f32 (!%p178_p3), 3328 }
   0x9   : > { %5811 = vmatprep.subr.msk.bf16.mxu1 (!%p178_p3), %vm403_vm0, %v252_v4  ;;  %5824 = vmatprep.subr.msk.bf16.mxu0 (!%p178_p3), %vm403_vm0, %v4985_v5  ;;  %vm262_vm2 = vsmask.f32 (!%p178_p3), 7440  ;;  %v5999_v7 = vsel (!%p178_p3), %vm403_vm0, %v252_v4, 0  ;;  %v6002_v8 = vsel (!%p178_p3), %vm403_vm0, %v4985_v5, 0  ;;  %v6006_v9 = vsel (!%p178_p3), %vm403_vm0, %v5990_v6, 0 }
   0xa   : > { %v6011_v10 = vld [vmem:[%s7045_s1 + $0x4] sm:$0x3] (!%p178_p3)  ;;  %vm6045_vm4 = vmor (!%p178_p3), %vm261_vm1, %vm262_vm2  ;;  %vm596_vm5 = vcmask (!%p178_p3), 1042432   ;;  %vm597_vm6 = vcmask (!%p178_p3), 1046532  }
   0xb   : > { %v6035_v23 = vsel (!%p178_p3), %vm403_vm0, %v6011_v10, 0  ;;  %vm6167_vm7 = vmor (!%p178_p3), %vm596_vm5, %vm597_vm6 }
   0xe   : > { %s7057_s12 = smov (!%p215_p4, %s5916_s12), 1 }
   0xf   : > { %s5836_s26 = smul.u32 320, %s7057_s12 }
  0x11   : > { %s5996_s29 = scalar_lea.vmem %s7044_s0, %s5836_s26 }
  0x12   : > { %v6014_v11 = vld [vmem:[%s5996_s29] sm:$0xf]  ;;  %v6017_v12 = vld [vmem:[%s5996_s29 + $0x8] sm:$0xf]  ;;  %v6020_v13 = vld [vmem:[%s5996_s29 + $0x4] sm:$0x1] }
  0x13   : > { %v6023_v14 = vld [vmem:[%s5996_s29 + $0xc] sm:$0x1]  ;;  %v265_v15 = vshrl.u32 %v6014_v11, 16  ;;  %v268_v16 = vshll.u32 %v6014_v11, 16  ;;  %v274_v17 = vshll.u32 %v6020_v13, 16  ;;  %v279_v18 = vshrl.u32 %v6017_v12, 16 }
  0x14   : > { %v282_v19 = vshll.u32 %v6017_v12, 16  ;;  %v288_v20 = vshll.u32 %v6023_v14, 16  ;;  %v601_v21 = vrot.slane %v6020_v13, 5  ;;  %v4952_v22 = vld [vmem:[%s5996_s29 + $0x58] sm:$0xf]  ;;  %v605_v4 = vrot.slane %v6023_v14, 5 }
  0x15   : > { %v267_v24 = vrot.slane %v265_v15, 4  ;;  %v270_v25 = vrot.slane %v268_v16, 5  ;;  %v276_v26 = vrot.slane %v274_v17, 5  ;;  %v281_v27 = vrot.slane %v279_v18, 4  ;;  %v4953_v28 = vld [vmem:[%s5996_s29 + $0x5c] sm:$0x1] }
  0x16   : > { %v284_v29 = vrot.slane %v282_v19, 5  ;;  %v290_v30 = vrot.slane %v288_v20, 5  ;;  %v4954_v31 = vld [vmem:[%s5996_s29 + $0x60] sm:$0xf]  ;;  %v4955_v32 = vld [vmem:[%s5996_s29 + $0x64] sm:$0x1] }
  0x17   : > { %v271_v33 = vor.u32 %v270_v25, %v267_v24  ;;  %v2242_v34 = vshrl.u32 %v4952_v22, 16  ;;  %v2245_v35 = vshll.u32 %v4952_v22, 16  ;;  %v2251_v36 = vshll.u32 %v4953_v28, 16  ;;  %v6041_v37 = vld [vmem:[%s5996_s29 + $0x10] sm:$0xf] }
  0x18   : > { %v285_v39 = vor.u32 %v284_v29, %v281_v27  ;;  %v2256_v40 = vshrl.u32 %v4954_v31, 16  ;;  %v2259_v41 = vshll.u32 %v4954_v31, 16  ;;  %v2265_v42 = vshll.u32 %v4955_v32, 16  ;;  %v6050_v43 = vld [vmem:[%s5996_s29 + $0x18] sm:$0xf] }
  0x19   : > { %v272_v44 = vrot.slane %v271_v33, 4  ;;  %v2244_v45 = vrot.slane %v2242_v34, 4  ;;  %v2247_v46 = vrot.slane %v2245_v35, 5  ;;  %v2253_v47 = vrot.slane %v2251_v36, 5  ;;  %v6053_v48 = vld [vmem:[%s5996_s29 + $0x14] sm:$0x1] }
  0x1a   : > { %v286_v49 = vrot.slane %v285_v39, 4  ;;  %v2258_v50 = vrot.slane %v2256_v40, 4  ;;  %v2261_v51 = vrot.slane %v2259_v41, 5  ;;  %v2267_v52 = vrot.slane %v2265_v42, 5  ;;  %v6062_v59 = vld [vmem:[%s5996_s29 + $0x1c] sm:$0x1] }
  0x1b   : > { %v277_v53 = vsel %vm6045_vm4, %v272_v44, %v276_v26  ;;  %v2248_v54 = vor.u32 %v2247_v46, %v2244_v45  ;;  %v293_v55 = vshrl.u32 %v6041_v37, 16  ;;  %v296_v56 = vshll.u32 %v6041_v37, 16  ;;  %v4956_v2 = vld [vmem:[%s5996_s29 + $0x68] sm:$0xf]  ;;  %v4957_v22 = vld [vmem:[%s5996_s29 + $0x6c] sm:$0x1] }
  0x1c   : > { %v291_v57 = vsel %vm6045_vm4, %v286_v49, %v290_v30  ;;  %v2262_v58 = vor.u32 %v2261_v51, %v2258_v50  ;;  %v302_v60 = vshll.u32 %v6053_v48, 16  ;;  %v307_v61 = vshrl.u32 %v6050_v43, 16  ;;  %v4958_v24 = vld [vmem:[%s5996_s29 + $0x70] sm:$0xf]  ;;  %v4959_v27 = vld [vmem:[%s5996_s29 + $0x74] sm:$0x1] }
  0x1d   : > { %v4726_v62 = vcombine.low %v277_v53, %v291_v57  ;;  %v2249_v63 = vrot.slane %v2248_v54, 4  ;;  %v295_v0 = vrot.slane %v293_v55, 4  ;;  %v298_v1 = vrot.slane %v296_v56, 5  ;;  %v6079_v29 = vld [vmem:[%s5996_s29 + $0x20] sm:$0xf] }
  0x1e   : > { %v2263_v5 = vrot.slane %v2262_v58, 4  ;;  %v309_v15 = vrot.slane %v307_v61, 4  ;;  %v310_v16 = vshll.u32 %v6050_v43, 16  ;;  %v304_v19 = vrot.slane %v302_v60, 5  ;;  %v6082_v34 = vld [vmem:[%s5996_s29 + $0x28] sm:$0xf] }
  0x1f   : > { %5368 = vmatprep.mubr.msk.bf16.mxu1 %vm390_vm3, %v4726_v62  ;;  %v2254_v17 = vsel %vm6045_vm4, %v2249_v63, %v2253_v47  ;;  %v299_v18 = vor.u32 %v298_v1, %v295_v0  ;;  %v316_v20 = vshll.u32 %v6062_v59, 16  ;;  %v2270_v28 = vshrl.u32 %v4956_v2, 16  ;;  %v6085_v41 = vld [vmem:[%s5996_s29 + $0x24] sm:$0x1]  ;;  %v6091_v47 = vld [vmem:[%s5996_s29 + $0x2c] sm:$0x1] }
  0x20   : > { %v2268_v25 = vsel %vm6045_vm4, %v2263_v5, %v2267_v52  ;;  %v312_v26 = vrot.slane %v310_v16, 5  ;;  %v2273_v33 = vshll.u32 %v4956_v2, 16  ;;  %v2279_v39 = vshll.u32 %v4957_v22, 16  ;;  %v6095_v53 = vld [vmem:[%s5996_s29 + $0x30] sm:$0xf] }
  0x21   : > { %v4969_v30 = vcombine.low %v2254_v17, %v2268_v25  ;;  %v300_v31 = vrot.slane %v299_v18, 4  ;;  %v318_v32 = vrot.slane %v316_v20, 5  ;;  %v2272_v36 = vrot.slane %v2270_v28, 4  ;;  %v6103_v63 = vld [vmem:[%s5996_s29 + $0x38] sm:$0xf] }
  0x22   : > { %v313_v35 = vor.u32 %v312_v26, %v309_v15  ;;  %v2284_v40 = vshrl.u32 %v4958_v24, 16  ;;  %v2275_v44 = vrot.slane %v2273_v33, 5  ;;  %v2287_v45 = vshll.u32 %v4958_v24, 16  ;;  %v6106_v0 = vld [vmem:[%s5996_s29 + $0x34] sm:$0x1] }
  0x23   : > { %5488 = vmatprep.mubr.msk.bf16.mxu0 %vm390_vm3, %v4969_v30  ;;  %v305_v42 = vsel %vm6045_vm4, %v300_v31, %v304_v19  ;;  %v2293_v46 = vshll.u32 %v4959_v27, 16  ;;  %v2281_v50 = vrot.slane %v2279_v39, 5  ;;  %v321_v52 = vshrl.u32 %v6079_v29, 16  ;;  %v6111_v19 = vld [vmem:[%s5996_s29 + $0x3c] sm:$0x1] }
  0x24   : > { %v314_v49 = vrot.slane %v313_v35, 4  ;;  %v2286_v51 = vrot.slane %v2284_v40, 4  ;;  %v2276_v54 = vor.u32 %v2275_v44, %v2272_v36  ;;  %v2289_v55 = vrot.slane %v2287_v45, 5  ;;  %v5004_v13 = vld [vmem:[%s5996_s29 + $0x88] sm:$0xf] }
  0x25   : > { %v2295_v56 = vrot.slane %v2293_v46, 5  ;;  %v324_v57 = vshll.u32 %v6079_v29, 16  ;;  %v323_v60 = vrot.slane %v321_v52, 4  ;;  %v330_v61 = vshll.u32 %v6085_v41, 16 }
  0x26   : > { %v319_v58 = vsel %vm6045_vm4, %v314_v49, %v318_v32  ;;  %v335_v62 = vshrl.u32 %v6082_v34, 16  ;;  %v2277_v2 = vrot.slane %v2276_v54, 4  ;;  %v2290_v5 = vor.u32 %v2289_v55, %v2286_v51  ;;  %v5861_v32 = vld [vmem:[%s5996_s29 + $0x60] ss:$8 sps:$4 sm:$0xff]  }
  0x27   : > { %v4727_v1 = vcombine.low %v305_v42, %v319_v58  ;;  %v326_v15 = vrot.slane %v324_v57, 5  ;;  %v338_v17 = vshll.u32 %v6082_v34, 16  ;;  %v344_v18 = vshll.u32 %v6091_v47, 16  ;;  %v4994_v51 = vld [vmem:[%s5996_s29 + $0x60] sm:$0xf] }
  0x28   : > { %v337_v16 = vrot.slane %v335_v62, 4  ;;  %v4734_v20 = vcombine.low %v6014_v11, %v6017_v12  ;;  %v2282_v22 = vsel %vm6045_vm4, %v2277_v2, %v2281_v50  ;;  %v2291_v24 = vrot.slane %v2290_v5, 4  ;;  %v4996_v57 = vld [vmem:[%s5996_s29 + $0x68] sm:$0xf]  ;;  %v4997_v62 = vld [vmem:[%s5996_s29 + $0x6c] sm:$0x1] }
  0x29   : > { %5369 = vmatmul.mubr.msk.bf16.vlgmr.msra.gmra.mrb[0].mxu1 %vm390_vm3, %v4727_v1  ;;  %v327_v25 = vor.u32 %v326_v15, %v323_v60  ;;  %v349_v26 = vshrl.u32 %v6095_v53, 16  ;;  %v332_v27 = vrot.slane %v330_v61, 5  ;;  %v340_v28 = vrot.slane %v338_v17, 5  ;;  %v4998_v17 = vld [vmem:[%s5996_s29 + $0x70] sm:$0xf] }
  0x2a   : > { %5377 = vmatpush3.bf16.msra.mxu1 %v5999_v7  ;;  %v352_v30 = vshll.u32 %v6095_v53, 16  ;;  %v358_v31 = vshll.u32 %v6106_v0, 16  ;;  %v2296_v33 = vsel %vm6045_vm4, %v2291_v24, %v2295_v56  ;;  %v363_v39 = vshrl.u32 %v6103_v63, 16  ;;  %v4995_v56 = vld [vmem:[%s5996_s29 + $0x64] sm:$0x1] }
  0x2b   : > { %v328_v35 = vrot.slane %v327_v25, 4  ;;  %v351_v36 = vrot.slane %v349_v26, 4  ;;  %5812 = vmatprep.subr.msk.bf16.mxu1 %vm403_vm0, %v6011_v10  ;;  %v4970_v40 = vcombine.low %v2282_v22, %v2296_v33  ;;  %v341_v7 = vor.u32 %v340_v28, %v337_v16  ;;  %v4999_v25 = vld [vmem:[%s5996_s29 + $0x74] sm:$0x1] }
  0x2c   : > { %v346_v42 = vrot.slane %v344_v18, 5  ;;  %v354_v44 = vrot.slane %v352_v30, 5  ;;  %v609_v45 = vrot.slane %v6053_v48, 5  ;;  %v365_v46 = vrot.slane %v363_v39, 4 }
  0x2d   : > { %v366_v49 = vshll.u32 %v6103_v63, 16  ;;  %v372_v50 = vshll.u32 %v6111_v19, 16  ;;  %5489 = vmatmul.mubr.msk.bf16.vlgmr.msra.gmra.mrb[0].mxu0 %vm390_vm3, %v4970_v40  ;;  %v333_v10 = vsel %vm6045_vm4, %v328_v35, %v332_v27  ;;  %v342_v52 = vrot.slane %v341_v7, 4  ;;  %v5001_v40 = vld [vmem:[%s5996_s29 + $0x7c] sm:$0x1] }
  0x2e   : > { %v355_v54 = vor.u32 %v354_v44, %v351_v36  ;;  %v360_v55 = vrot.slane %v358_v31, 5  ;;  %v613_v58 = vrot.slane %v6062_v59, 5  ;;  %5497 = vmatpush3.bf16.msra.mxu0 %v6002_v8  ;;  %5498 = vmatprep.mubr.msk.bf16.mxu0 %vm390_vm3, %v5861_v32  ;;  %v2593_v1 = vshrl.u32 %v4994_v51, 16  ;;  %v5000_v31 = vld [vmem:[%s5996_s29 + $0x78] sm:$0xf] }
  0x2f   : > { %v368_v60 = vrot.slane %v366_v49, 5  ;;  %v374_v61 = vrot.slane %v372_v50, 5  ;;  %v347_v2 = vsel %vm6045_vm4, %v342_v52, %v346_v42  ;;  %5825 = vmatprep.subr.msk.bf16.mxu0 %vm403_vm0, %v5990_v6  ;;  %v2596_v15 = vshll.u32 %v4994_v51, 16  ;;  %v572_v51 = vld [vmem:[%s5996_s29] sm:$0xe] }
  0x30   : > { %v356_v5 = vrot.slane %v355_v54, 4  ;;  %v2602_v16 = vshll.u32 %v4995_v56, 16  ;;  %v4728_v18 = vcombine.low %v333_v10, %v347_v2  ;;  %v2595_v22 = vrot.slane %v2593_v1, 4  ;;  %v5862_v52 = vld [vmem:[%s5996_s29 + $0x70] ss:$8 sps:$4 sm:$0xff]  }
  0x31   : > { %v369_v8 = vor.u32 %v368_v60, %v365_v46  ;;  %v2607_v24 = vshrl.u32 %v4996_v57, 16  ;;  %v2598_v27 = vrot.slane %v2596_v15, 5  ;;  %v2610_v30 = vshll.u32 %v4996_v57, 16  ;;  %v573_v57 = vld [vmem:[%s5996_s29 + $0x8] sm:$0xe] }
  0x32   : > { %v361_v26 = vsel %vm6045_vm4, %v356_v5, %v360_v55  ;;  %v2604_v28 = vrot.slane %v2602_v16, 5  ;;  %5372 = vmatprep.mubr.msk.bf16.mxu1 %vm390_vm3, %v4728_v18  ;;  %v2616_v33 = vshll.u32 %v4997_v62, 16  ;;  %v2621_v35 = vshrl.u32 %v4998_v17, 16  ;;  %v5865_v62 = vld [vmem:[%s5996_s29 + $0x80] ss:$8 sps:$4 sm:$0xff]  }
  0x33   : > { %v370_v6 = vrot.slane %v369_v8, 4  ;;  %v2609_v32 = vrot.slane %v2607_v24, 4  ;;  %v2599_v36 = vor.u32 %v2598_v27, %v2595_v22  ;;  %v2612_v39 = vrot.slane %v2610_v30, 5  ;;  %v6163_v1 = vld [vmem:[%s7045_s1 + $0x1e] sm:$0x3] }
  0x34   : > { %v2624_v7 = vshll.u32 %v4998_v17, 16  ;;  %v2630_v42 = vshll.u32 %v4999_v25, 16  ;;  %v2618_v46 = vrot.slane %v2616_v33, 5  ;;  %v2623_v49 = vrot.slane %v2621_v35, 4  ;;  %v5002_v18 = vld [vmem:[%s5996_s29 + $0x80] sm:$0xf] }
  0x35   : > { %v375_v44 = vsel %vm6045_vm4, %v370_v6, %v374_v61  ;;  %v2635_v50 = vshrl.u32 %v5000_v31, 16  ;;  %v2600_v54 = vrot.slane %v2599_v36, 4  ;;  %v2613_v55 = vor.u32 %v2612_v39, %v2609_v32  ;;  %v6185_v27 = vld [vmem:[%s5996_s29 + $0x18] sm:$0xe]  ;;  %v5005_v6 = vld [vmem:[%s5996_s29 + $0x8c] sm:$0x1] }
  0x36   : > { %v4729_v10 = vcombine.low %v361_v26, %v375_v44  ;;  %v2626_v56 = vrot.slane %v2624_v7, 5  ;;  %v4735_v60 = vcombine.low %v6041_v37, %v6050_v43  ;;  %v2638_v2 = vshll.u32 %v5000_v31, 16  ;;  %v6182_v26 = vld [vmem:[%s5996_s29 + $0x10] sm:$0xe]  ;;  %v5007_v44 = vld [vmem:[%s5996_s29 + $0x94] sm:$0x1] }
  0x37   : > { %v2637_v61 = vrot.slane %v2635_v50, 4  ;;  %v2644_v5 = vshll.u32 %v5001_v40, 16  ;;  %v2614_v37 = vrot.slane %v2613_v55, 4  ;;  %v2632_v16 = vrot.slane %v2630_v42, 5  ;;  %v5866_v32 = vld [vmem:[%s5996_s29 + $0x90] ss:$8 sps:$4 sm:$0xff]  }
  0x38   : > { %5373 = vmatmul.mubr.msk.bf16.gmra.mrb[4].mxu1 %vm390_vm3, %v4729_v10  ;;  %v2627_v43 = vor.u32 %v2626_v56, %v2623_v49  ;;  %v4742_v17 = vrot.slane %v572_v51, 9  ;;  %v4736_v8 = vcombine.low %v6079_v29, %v6082_v34  ;;  %v2605_v22 = vsel %vm6045_vm4, %v2600_v54, %v2604_v28  ;;  %v6222_v40 = vld [vmem:[%s7045_s1 + $0x6] sm:$0x3] }
  0x39   : > { %5378 = vmatprep.mubr.msk.bf16.mxu1 %vm390_vm3, %v4734_v20  ;;  %v2640_v24 = vrot.slane %v2638_v2, 5  ;;  %v4743_v25 = vrot.slane %v573_v57, 9  ;;  %5499 = vmatmul.mubr.msk.bf16.vlgmr.msra.gmra.mrb[0].mxu0 %vm390_vm3, %v5862_v52  ;;  %v4737_v11 = vcombine.low %v6095_v53, %v6103_v63  ;;  %v2619_v12 = vsel %vm6045_vm4, %v2614_v37, %v2618_v46  ;;  %v5003_v20 = vld [vmem:[%s5996_s29 + $0x84] sm:$0x1]  ;;  %v5008_v46 = vld [vmem:[%s5996_s29 + $0x98] sm:$0xf] }
  0x3a   : > { %v2628_v29 = vrot.slane %v2627_v43, 4  ;;  %v6196_v34 = vsel %vm6167_vm7, %v4742_v17, %v601_v21  ;;  %5507 = vmatpush3.bf16.msra.mxu0 %v6006_v9  ;;  %5502 = vmatprep.mubr.msk.bf16.mxu0 %vm390_vm3, %v5865_v62  ;;  %v2646_v30 = vrot.slane %v2644_v5, 5  ;;  %v2649_v21 = vshrl.u32 %v5002_v18, 16  ;;  %v5009_v52 = vld [vmem:[%s5996_s29 + $0x9c] sm:$0x1] }
  0x3b   : > { %v2641_v28 = vor.u32 %v2640_v24, %v2637_v61  ;;  %v6205_v31 = vsel %vm6167_vm7, %v4743_v25, %v605_v4  ;;  %v5011_v33 = vcombine.low %v2605_v22, %v2619_v12  ;;  %5826 = vmatprep.subr.msk.bf16.mxu0 %vm403_vm0, %v6163_v1  ;;  %v4744_v14 = vrot.slane %v6182_v26, 9  ;;  %v5006_v4 = vld [vmem:[%s5996_s29 + $0x90] sm:$0xf]  ;;  %v576_v62 = vld [vmem:[%s5996_s29 + $0x20] sm:$0xe] }
  0x3c   : > { %v2633_v9 = vsel %vm6045_vm4, %v2628_v29, %v2632_v16  ;;  %v4745_v35 = vrot.slane %v6185_v27, 9  ;;  %v4751_v39 = vcombine.low %v6196_v34, %v6205_v31  ;;  %v2651_v7 = vrot.slane %v2649_v21, 4  ;;  %v577_v12 = vld [vmem:[%s5996_s29 + $0x28] sm:$0xe] }
  0x3d   : > { %v2642_v36 = vrot.slane %v2641_v28, 4  ;;  %v2652_v42 = vshll.u32 %v5002_v18, 16  ;;  %v2658_v49 = vshll.u32 %v5003_v20, 16  ;;  %v2663_v50 = vshrl.u32 %v5004_v13, 16  ;;  %v578_v20 = vld [vmem:[%s5996_s29 + $0x30] sm:$0xe] }
  0x3e   : > { %v2666_v51 = vshll.u32 %v5004_v13, 16  ;;  %v2672_v10 = vshll.u32 %v5005_v6, 16  ;;  %v2677_v56 = vshrl.u32 %v5006_v4, 16  ;;  %v2680_v57 = vshll.u32 %v5006_v4, 16  ;;  %v579_v4 = vld [vmem:[%s5996_s29 + $0x38] sm:$0xe] }
  0x3f   : > { %v2647_v54 = vsel %vm6045_vm4, %v2642_v36, %v2646_v30  ;;  %v2654_v55 = vrot.slane %v2652_v42, 5  ;;  %v2660_v2 = vrot.slane %v2658_v49, 5  ;;  %v2665_v5 = vrot.slane %v2663_v50, 4  ;;  %v5052_v49 = vld [vmem:[%s7045_s1 + $0x20] sm:$0x3] }
  0x40   : > { %5379 = vmatmul.mubr.msk.bf16.vlgmr.msra.gmra.mrb[0].mxu1 %vm390_vm3, %v4735_v60  ;;  %v5012_v61 = vcombine.low %v2633_v9, %v2647_v54  ;;  %v2668_v37 = vrot.slane %v2666_v51, 5  ;;  %v2674_v16 = vrot.slane %v2672_v10, 5  ;;  %v2679_v17 = vrot.slane %v2677_v56, 4  ;;  %v6303_v54 = vld [vmem:[%s5996_s29 + $0xa4] sm:$0x1] }
  0x41   : > { %5387 = vmatpush3.bf16.msra.mxu1 %v6035_v23  ;;  %5382 = vmatprep.mubr.msk.bf16.mxu1 %vm390_vm3, %v4736_v8  ;;  %v2655_v43 = vor.u32 %v2654_v55, %v2651_v7  ;;  %v2682_v18 = vrot.slane %v2680_v57, 5  ;;  %v2686_v22 = vshll.u32 %v5007_v44, 16  ;;  %v2691_v24 = vshrl.u32 %v5008_v46, 16  ;;  %v5038_v55 = vld [vmem:[%s5996_s29 + $0xa8] sm:$0xf] }
  0x42   : > { %5503 = vmatmul.mubr.msk.bf16.gmra.mrb[4].mxu0 %vm390_vm3, %v5866_v32  ;;  %5813 = vmatprep.subr.msk.bf16.mxu1 %vm403_vm0, %v6222_v40  ;;  %v2669_v60 = vor.u32 %v2668_v37, %v2665_v5  ;;  %v2694_v25 = vshll.u32 %v5008_v46, 16  ;;  %v2700_v29 = vshll.u32 %v5009_v52, 16  ;;  %v4746_v34 = vrot.slane %v576_v62, 9  ;;  %v5869_v52 = vld [vmem:[%s5996_s29 + $0xa0] ss:$8 sps:$4 sm:$0xff]  }
  0x43   : > { %5508 = vmatprep.mubr.msk.bf16.mxu0 %vm390_vm3, %v5011_v33  ;;  %v2656_v23 = vrot.slane %v2655_v43, 4  ;;  %v2683_v8 = vor.u32 %v2682_v18, %v2679_v17  ;;  %v2688_v30 = vrot.slane %v2686_v22, 5  ;;  %v2693_v31 = vrot.slane %v2691_v24, 4  ;;  %v6307_v56 = vld [vmem:[%s5996_s29 + $0xac] sm:$0x1] }
  0x44   : > { %v2670_v28 = vrot.slane %v2669_v60, 4  ;;  %v2696_v13 = vrot.slane %v2694_v25, 5  ;;  %v2702_v32 = vrot.slane %v2700_v29, 5  ;;  %v617_v9 = vrot.slane %v6085_v41, 5  ;;  %v5040_v5 = vld [vmem:[%s5996_s29 + $0xb0] sm:$0xf] }
  0x45   : > { %v2661_v6 = vsel %vm6045_vm4, %v2656_v23, %v2660_v2  ;;  %v2684_v21 = vrot.slane %v2683_v8, 4  ;;  %v4747_v7 = vrot.slane %v577_v12, 9  ;;  %v621_v42 = vrot.slane %v6091_v47, 5  ;;  %v6315_v17 = vld [vmem:[%s5996_s29 + $0xb4] sm:$0x1] }
  0x46   : > { %v2675_v33 = vsel %vm6045_vm4, %v2670_v28, %v2674_v16  ;;  %v2697_v36 = vor.u32 %v2696_v13, %v2693_v31  ;;  %v2852_v44 = vsel %vm403_vm0, %v6163_v1, 0  ;;  %v4748_v50 = vrot.slane %v578_v20, 9  ;;  %v5042_v18 = vld [vmem:[%s5996_s29 + $0xb8] sm:$0xf]  ;;  %v6320_v12 = vld [vmem:[%s5996_s29 + $0xbc] sm:$0x1] }
  0x47   : > { %v5013_v46 = vcombine.low %v2661_v6, %v2675_v33  ;;  %v625_v51 = vrot.slane %v6106_v0, 5  ;;  %v4749_v10 = vrot.slane %v579_v4, 9  ;;  %v610_v47 = vsel %vm6167_vm7, %v4744_v14, %v609_v45  ;;  %v4792_v0 = vld [vmem:[%s7045_s1 + $0x8] sm:$0x3]  ;;  %v6326_v29 = vld [vmem:[%s7045_s1 + $0x22] sm:$0x3] }
  0x48   : > { %5383 = vmatmul.mubr.msk.bf16.gmra.mrb[4].mxu1 %vm390_vm3, %v4737_v11  ;;  %v2698_v41 = vrot.slane %v2697_v36, 4  ;;  %v614_v53 = vsel %vm6167_vm7, %v4745_v35, %v613_v58  ;;  %v629_v63 = vrot.slane %v6111_v19, 5  ;;  %v2689_v48 = vsel %vm6045_vm4, %v2684_v21, %v2688_v30  ;;  %v5036_v35 = vld [vmem:[%s5996_s29 + $0xa0] sm:$0xf]  ;;  %v4776_v6 = vld [vmem:[%s5996_s29 + $0x8] sm:$0xf] }
  0x49   : > { %5388 = vmatprep.mubr.msk.bf16.mxu1 %vm390_vm3, %v4751_v39  ;;  %v618_v45 = vsel %vm6167_vm7, %v4746_v34, %v617_v9  ;;  %v622_v19 = vsel %vm6167_vm7, %v4747_v7, %v621_v42  ;;  %v780_v58 = vsel %vm403_vm0, %v6222_v40, 0  ;;  %v6286_v1 = vsel %vm403_vm0, %v5052_v49, 0  ;;  %v6335_v33 = vld [vmem:[%s5996_s29 + $0xc] sm:$0x1]  ;;  %v5870_v36 = vld [vmem:[%s5996_s29 + $0xb0] ss:$8 sps:$4 sm:$0xff]  }
  0x4a   : > { %5509 = vmatmul.mubr.msk.bf16.vlgmr.msra.gmra.mrb[0].mxu0 %vm390_vm3, %v5012_v61  ;;  %v2703_v59 = vsel %vm6045_vm4, %v2698_v41, %v2702_v32  ;;  %v4752_v26 = vcombine.low %v610_v47, %v614_v53  ;;  %v6290_v27 = vsel %vm6167_vm7, %v4748_v50, %v625_v51  ;;  %v6294_v11 = vsel %vm6167_vm7, %v4749_v10, %v629_v63  ;;  %v5871_v41 = vld [vmem:[%s5996_s29 + $0x8] ss:$8 sps:$4 sm:$0xff]  }
  0x4b   : > { %5517 = vmatpush3.bf16.msra.mxu0 %v2852_v44  ;;  %5512 = vmatprep.mubr.msk.bf16.mxu0 %vm390_vm3, %v5013_v46  ;;  %v6298_v14 = vsel %vm403_vm0, %v4792_v0, 0  ;;  %v5014_v39 = vcombine.low %v2689_v48, %v2703_v59  ;;  %v4753_v40 = vcombine.low %v618_v45, %v622_v19  ;;  %v2944_v57 = vshrl.u32 %v5036_v35, 16  ;;  %v5873_v53 = vld [vmem:[%s5996_s29 + $0xc0] ss:$8 sps:$4 sm:$0xff]   ;;  %v6348_v48 = vld [vmem:[%s5996_s29 + $0x14] sm:$0x1] }
  0x4c   : > { %5827 = vmatprep.subr.msk.bf16.mxu0 %vm403_vm0, %v5052_v49  ;;  %v2947_v62 = vshll.u32 %v5036_v35, 16  ;;  %v2953_v61 = vshll.u32 %v6303_v54, 16  ;;  %v2958_v2 = vshrl.u32 %v5038_v55, 16  ;;  %v4754_v37 = vcombine.low %v6290_v27, %v6294_v11  ;;  %v4778_v49 = vld [vmem:[%s5996_s29 + $0x10] sm:$0xf] }
  0x4d   : > { %v2961_v43 = vshll.u32 %v5038_v55, 16  ;;  %v2967_v16 = vshll.u32 %v6307_v56, 16  ;;  %v2946_v60 = vrot.slane %v2944_v57, 4  ;;  %v2972_v34 = vshrl.u32 %v5040_v5, 16  ;;  %v4780_v11 = vld [vmem:[%s5996_s29 + $0x18] sm:$0xf] }
  0x4e   : > { %v2949_v22 = vrot.slane %v2947_v62, 5  ;;  %v2955_v24 = vrot.slane %v2953_v61, 5  ;;  %v2960_v25 = vrot.slane %v2958_v2, 4  ;;  %v2975_v20 = vshll.u32 %v5040_v5, 16  ;;  %v6358_v55 = vld [vmem:[%s5996_s29 + $0x1c] sm:$0x1] }
  0x4f   : > { %v2963_v23 = vrot.slane %v2961_v43, 5  ;;  %v2969_v8 = vrot.slane %v2967_v16, 5  ;;  %v2981_v30 = vshll.u32 %v6315_v17, 16  ;;  %v2986_v31 = vshrl.u32 %v5042_v18, 16  ;;  %v4782_v5 = vld [vmem:[%s5996_s29 + $0x20] sm:$0xf] }
  0x50   : > { %5389 = vmatmul.mubr.msk.bf16.vlgmr.msra.gmra.mrb[0].mxu1 %vm390_vm3, %v4752_v26  ;;  %v2950_v28 = vor.u32 %v2949_v22, %v2946_v60  ;;  %v2989_v13 = vshll.u32 %v5042_v18, 16  ;;  %v2974_v32 = vrot.slane %v2972_v34, 4  ;;  %v2977_v9 = vrot.slane %v2975_v20, 5  ;;  %v4817_v60 = vld [vmem:[%s7045_s1 + $0xa] sm:$0x3] }
  0x51   : > { %5397 = vmatpush3.bf16.msra.mxu1 %v780_v58  ;;  %5392 = vmatprep.mubr.msk.bf16.mxu1 %vm390_vm3, %v4753_v40  ;;  %v2964_v21 = vor.u32 %v2963_v23, %v2960_v25  ;;  %v2995_v4 = vshll.u32 %v6320_v12, 16  ;;  %v2983_v42 = vrot.slane %v2981_v30, 5  ;;  %v2988_v44 = vrot.slane %v2986_v31, 4  ;;  %v6373_v22 = vld [vmem:[%s5996_s29 + $0x24] sm:$0x1] }
  0x52   : > { %5513 = vmatmul.mubr.msk.bf16.gmra.mrb[4].mxu0 %vm390_vm3, %v5014_v39  ;;  %5814 = vmatprep.subr.msk.bf16.mxu1 %vm403_vm0, %v4792_v0  ;;  %v2951_v7 = vrot.slane %v2950_v28, 4  ;;  %v2991_v46 = vrot.slane %v2989_v13, 5  ;;  %v2978_v51 = vor.u32 %v2977_v9, %v2974_v32  ;;  %v6342_v47 = vsel %vm403_vm0, %v6326_v29, 0  ;;  %v5875_v25 = vld [vmem:[%s5996_s29 + $0x28] ss:$8 sps:$4 sm:$0xff]  }
  0x53   : > { %5518 = vmatprep.mubr.msk.bf16.mxu0 %vm390_vm3, %v5869_v52  ;;  %v2965_v50 = vrot.slane %v2964_v21, 4  ;;  %v2997_v10 = vrot.slane %v2995_v4, 5  ;;  %v872_v59 = vshrl.u32 %v4776_v6, 16  ;;  %v875_v45 = vshll.u32 %v4776_v6, 16  ;;  %v5044_v28 = vld [vmem:[%s5996_s29 + $0xc0] sm:$0xf] }
  0x54   : > { %v2956_v63 = vsel %vm6045_vm4, %v2951_v7, %v2955_v24  ;;  %v2992_v0 = vor.u32 %v2991_v46, %v2988_v44  ;;  %v2979_v58 = vrot.slane %v2978_v51, 4  ;;  %v881_v26 = vshll.u32 %v6335_v33, 16  ;;  %v5874_v7 = vld [vmem:[%s5996_s29 + $0xd0] ss:$8 sps:$4 sm:$0xff]  }
  0x55   : > { %v2970_v19 = vsel %vm6045_vm4, %v2965_v50, %v2969_v8  ;;  %v886_v27 = vshrl.u32 %v4778_v49, 16  ;;  %v874_v40 = vrot.slane %v872_v59, 4  ;;  %v877_v52 = vrot.slane %v875_v45, 5 }
  0x56   : > { %v6355_v35 = vcombine.low %v2956_v63, %v2970_v19  ;;  %v2993_v39 = vrot.slane %v2992_v0, 4  ;;  %v2984_v57 = vsel %vm6045_vm4, %v2979_v58, %v2983_v42  ;;  %v883_v62 = vrot.slane %v881_v26, 5 }
  0x57   : > { %v888_v61 = vrot.slane %v886_v27, 4  ;;  %v889_v2 = vshll.u32 %v4778_v49, 16  ;;  %v878_v16 = vor.u32 %v877_v52, %v874_v40  ;;  %v895_v18 = vshll.u32 %v6348_v48, 16  ;;  %v5048_v27 = vld [vmem:[%s5996_s29 + $0xd0] sm:$0xf] }
  0x58   : > { %5393 = vmatmul.mubr.msk.bf16.gmra.mrb[4].mxu1 %vm390_vm3, %v4754_v37  ;;  %v5872_v37 = vld [vmem:[%s5996_s29 + $0x18] ss:$8 sps:$4 sm:$0xff]   ;;  %v2998_v43 = vsel %vm6045_vm4, %v2993_v39, %v2997_v10  ;;  %v900_v24 = vshrl.u32 %v4780_v11, 16  ;;  %v903_v34 = vshll.u32 %v4780_v11, 16  ;;  %v909_v20 = vshll.u32 %v6358_v55, 16 }
  0x59   : > { %5398 = vmatprep.mubr.msk.bf16.mxu1 %vm390_vm3, %v5871_v41  ;;  %v6378_v23 = vcombine.low %v2984_v57, %v2998_v43  ;;  %v891_v8 = vrot.slane %v889_v2, 5  ;;  %v879_v30 = vrot.slane %v878_v16, 4  ;;  %v897_v31 = vrot.slane %v895_v18, 5  ;;  %v6406_v11 = vld [vmem:[%s5996_s29 + $0xd4] sm:$0x1] }
  0x5a   : > { %5519 = vmatmul.mubr.msk.bf16.vlgmr.msra.gmra.mrb[0].mxu0 %vm390_vm3, %v5870_v36  ;;  %v902_v13 = vrot.slane %v900_v24, 4  ;;  %v914_v6 = vshrl.u32 %v4782_v5, 16  ;;  %v905_v32 = vrot.slane %v903_v34, 5  ;;  %v911_v9 = vrot.slane %v909_v20, 5  ;;  %v5046_v36 = vld [vmem:[%s5996_s29 + $0xc8] sm:$0xf] }
  0x5b   : > { %5527 = vmatpush3.bf16.msra.mxu0 %v6286_v1  ;;  %5522 = vmatprep.mubr.msk.bf16.mxu0 %vm390_vm3, %v5873_v53  ;;  %v6385_v1 = vld [vmem:[%s5996_s29 + $0xc4] sm:$0x1]  ;;  %v892_v21 = vor.u32 %v891_v8, %v888_v61  ;;  %v917_v4 = vshll.u32 %v4782_v5, 16  ;;  %v884_v42 = vsel %vm6045_vm4, %v879_v30, %v883_v62  ;;  %v923_v46 = vshll.u32 %v6373_v22, 16  ;;  %v6397_v53 = vld [vmem:[%s5996_s29 + $0xcc] sm:$0x1] }
  0x5c   : > { %5828 = vmatprep.subr.msk.bf16.mxu0 %vm403_vm0, %v6326_v29  ;;  %v916_v44 = vrot.slane %v914_v6, 4  ;;  %v6393_v29 = vsel %vm403_vm0, %v4817_v60, 0  ;;  %v906_v41 = vor.u32 %v905_v32, %v902_v13  ;;  %v3000_v51 = vshrl.u32 %v5044_v28, 16  ;;  %v5050_v57 = vld [vmem:[%s5996_s29 + $0xd8] sm:$0xf] }
  0x5d   : > { %v893_v49 = vrot.slane %v892_v21, 4  ;;  %v919_v50 = vrot.slane %v917_v4, 5  ;;  %v925_v10 = vrot.slane %v923_v46, 5  ;;  %v3003_v63 = vshll.u32 %v5044_v28, 16  ;;  %v5876_v62 = vld [vmem:[%s5996_s29 + $0x38] ss:$8 sps:$4 sm:$0xff]  }
  0x5e   : > { %v3009_v0 = vshll.u32 %v6385_v1, 16  ;;  %v3014_v59 = vshrl.u32 %v5046_v36, 16  ;;  %v907_v19 = vrot.slane %v906_v41, 4  ;;  %v3002_v26 = vrot.slane %v3000_v51, 4  ;;  %v6418_v16 = vld [vmem:[%s5996_s29 + $0xdc] sm:$0x1] }
  0x5f   : > { %v898_v45 = vsel %vm6045_vm4, %v893_v49, %v897_v31  ;;  %v920_v58 = vor.u32 %v919_v50, %v916_v44  ;;  %v3005_v40 = vrot.slane %v3003_v63, 5  ;;  %v3017_v5 = vshll.u32 %v5046_v36, 16  ;;  %v4784_v20 = vld [vmem:[%s5996_s29 + $0x28] sm:$0xf]  ;;  %v6425_v6 = vld [vmem:[%s5996_s29 + $0x2c] sm:$0x1] }
  0x60   : > { %5399 = vmatmul.mubr.msk.bf16.vlgmr.msra.gmra.mrb[0].mxu1 %vm390_vm3, %v5872_v37  ;;  %v4793_v39 = vcombine.low %v884_v42, %v898_v45  ;;  %v3011_v52 = vrot.slane %v3009_v0, 5  ;;  %v912_v61 = vsel %vm6045_vm4, %v907_v19, %v911_v9  ;;  %v3023_v37 = vshll.u32 %v6397_v53, 16  ;;  %v4786_v36 = vld [vmem:[%s5996_s29 + $0x30] sm:$0xf]  ;;  %v6433_v46 = vld [vmem:[%s5996_s29 + $0x34] sm:$0x1] }
  0x61   : > { %5407 = vmatpush3.bf16.msra.mxu1 %v6298_v14  ;;  %5402 = vmatprep.mubr.msk.bf16.mxu1 %vm390_vm3, %v5875_v25  ;;  %v3016_v14 = vrot.slane %v3014_v59, 4  ;;  %v921_v2 = vrot.slane %v920_v58, 4  ;;  %v3006_v43 = vor.u32 %v3005_v40, %v3002_v26  ;;  %v3028_v18 = vshrl.u32 %v5048_v27, 16  ;;  %v6440_v63 = vld [vmem:[%s7045_s1 + $0x24] sm:$0x3] }
  0x62   : > { %5523 = vmatmul.mubr.msk.bf16.gmra.mrb[4].mxu0 %vm390_vm3, %v5874_v7  ;;  %5815 = vmatprep.subr.msk.bf16.mxu1 %vm403_vm0, %v4817_v60  ;;  %v3031_v60 = vshll.u32 %v5048_v27, 16  ;;  %v3037_v24 = vshll.u32 %v6406_v11, 16  ;;  %v3025_v8 = vrot.slane %v3023_v37, 5  ;;  %v3042_v34 = vshrl.u32 %v5050_v57, 16  ;;  %v4788_v58 = vld [vmem:[%s5996_s29 + $0x38] sm:$0xf] }
  0x63   : > { %5528 = vmatprep.mubr.msk.bf16.mxu0 %vm390_vm3, %v6355_v35  ;;  %v926_v25 = vsel %vm6045_vm4, %v921_v2, %v925_v10  ;;  %v3019_v35 = vrot.slane %v3017_v5, 5  ;;  %v3007_v30 = vrot.slane %v3006_v43, 4  ;;  %v3030_v31 = vrot.slane %v3028_v18, 4  ;;  %v6458_v37 = vld [vmem:[%s5996_s29 + $0x44] sm:$0x1] }
  0x64   : > { %v4794_v28 = vcombine.low %v912_v61, %v926_v25  ;;  %v3033_v13 = vrot.slane %v3031_v60, 5  ;;  %v3039_v32 = vrot.slane %v3037_v24, 5  ;;  %v3044_v9 = vrot.slane %v3042_v34, 4 }
  0x65   : > { %v3020_v21 = vor.u32 %v3019_v35, %v3016_v14  ;;  %v3045_v4 = vshll.u32 %v5050_v57, 16  ;;  %v3012_v7 = vsel %vm6045_vm4, %v3007_v30, %v3011_v52  ;;  %v3051_v44 = vshll.u32 %v6418_v16, 16  ;;  %v6449_v52 = vld [vmem:[%s5996_s29 + $0x3c] sm:$0x1]  ;;  %v4790_v14 = vld [vmem:[%s5996_s29 + $0x40] sm:$0xf] }
  0x66   : > { %v3034_v42 = vor.u32 %v3033_v13, %v3030_v31  ;;  %v928_v49 = vshrl.u32 %v4784_v20, 16  ;;  %v931_v51 = vshll.u32 %v4784_v20, 16  ;;  %v937_v10 = vshll.u32 %v6425_v6, 16  ;;  %v5061_v35 = vld [vmem:[%s5996_s29 + $0xa0] sm:$0xe] }
  0x67   : > { %v3021_v41 = vrot.slane %v3020_v21, 4  ;;  %v3047_v50 = vrot.slane %v3045_v4, 5  ;;  %v3053_v59 = vrot.slane %v3051_v44, 5  ;;  %v942_v19 = vshrl.u32 %v4786_v36, 16  ;;  %v6468_v31 = vld [vmem:[%s7045_s1 + $0xc] sm:$0x3] }
  0x68   : > { %5403 = vmatmul.mubr.msk.bf16.gmra.mrb[4].mxu1 %vm390_vm3, %v5876_v62  ;;  %v3035_v0 = vrot.slane %v3034_v42, 4  ;;  %v930_v45 = vrot.slane %v928_v49, 4  ;;  %v939_v40 = vrot.slane %v937_v10, 5  ;;  %v945_v61 = vshll.u32 %v4786_v36, 16  ;;  %v5062_v4 = vld [vmem:[%s5996_s29 + $0xa8] sm:$0xe] }
  0x69   : > { %5408 = vmatprep.mubr.msk.bf16.mxu1 %vm390_vm3, %v4793_v39  ;;  %v3026_v26 = vsel %vm6045_vm4, %v3021_v41, %v3025_v8  ;;  %v3048_v27 = vor.u32 %v3047_v50, %v3044_v9  ;;  %v933_v39 = vrot.slane %v931_v51, 5  ;;  %v944_v62 = vrot.slane %v942_v19, 4  ;;  %v5063_v49 = vld [vmem:[%s5996_s29 + $0xb0] sm:$0xe]  ;;  %v5064_v10 = vld [vmem:[%s5996_s29 + $0xb8] sm:$0xe] }
  0x6a   : > { %5529 = vmatmul.mubr.msk.bf16.vlgmr.msra.gmra.mrb[0].mxu0 %vm390_vm3, %v6378_v23  ;;  %v5055_v57 = vcombine.low %v3012_v7, %v3026_v26  ;;  %v3040_v23 = vsel %vm6045_vm4, %v3035_v0, %v3039_v32  ;;  %v951_v5 = vshll.u32 %v6433_v46, 16  ;;  %v956_v43 = vshrl.u32 %v4788_v58, 16  ;;  %v4801_v19 = vld [vmem:[%s5996_s29 + $0x8] sm:$0xe] }
  0x6b   : > { %5537 = vmatpush3.bf16.msra.mxu0 %v6342_v47  ;;  %v3049_v47 = vrot.slane %v3048_v27, 4  ;;  %v934_v2 = vor.u32 %v933_v39, %v930_v45  ;;  %v947_v18 = vrot.slane %v945_v61, 5  ;;  %v959_v60 = vshll.u32 %v4788_v58, 16  ;;  %v4802_v39 = vld [vmem:[%s5996_s29 + $0x10] sm:$0xe] }
  0x6c   : > { %5829 = vmatprep.subr.msk.bf16.mxu0 %vm403_vm0, %v6440_v63  ;;  %5532 = vmatprep.mubr.msk.bf16.mxu0 %vm390_vm3, %v5055_v57  ;;  %v965_v24 = vshll.u32 %v6449_v52, 16  ;;  %v970_v25 = vshrl.u32 %v4790_v14, 16  ;;  %v953_v20 = vrot.slane %v951_v5, 5  ;;  %v958_v30 = vrot.slane %v956_v43, 4  ;;  %v4804_v5 = vld [vmem:[%s5996_s29 + $0x20] sm:$0xe] }
  0x6d   : > { %v3054_v8 = vsel %vm6045_vm4, %v3049_v47, %v3053_v59  ;;  %v935_v34 = vrot.slane %v934_v2, 4  ;;  %v948_v21 = vor.u32 %v947_v18, %v944_v62  ;;  %v961_v32 = vrot.slane %v959_v60, 5 }
  0x6e   : > { %v5056_v13 = vcombine.low %v3040_v23, %v3054_v8  ;;  %v967_v9 = vrot.slane %v965_v24, 5  ;;  %v972_v7 = vrot.slane %v970_v25, 4  ;;  %v973_v42 = vshll.u32 %v4790_v14, 16  ;;  %v4803_v23 = vld [vmem:[%s5996_s29 + $0x18] sm:$0xe] }
  0x6f   : > { %v940_v36 = vsel %vm6045_vm4, %v935_v34, %v939_v40  ;;  %v979_v44 = vshll.u32 %v6458_v37, 16  ;;  %v962_v41 = vor.u32 %v961_v32, %v958_v30  ;;  %v5069_v50 = vrot.slane %v5061_v35, 9  ;;  %v5065_v24 = vld [vmem:[%s5996_s29 + $0xc0] sm:$0xe]  ;;  %v5066_v25 = vld [vmem:[%s5996_s29 + $0xc8] sm:$0xe] }
  0x70   : > { %5409 = vmatmul.mubr.msk.bf16.vlgmr.msra.gmra.mrb[0].mxu1 %vm390_vm3, %v4794_v28  ;;  %v949_v28 = vrot.slane %v948_v21, 4  ;;  %v3183_v51 = vrot.slane %v6303_v54, 5  ;;  %v5070_v59 = vrot.slane %v5062_v4, 9  ;;  %v3187_v45 = vrot.slane %v6307_v56, 5  ;;  %v5068_v30 = vld [vmem:[%s5996_s29 + $0xd8] sm:$0xe] }
  0x71   : > { %5417 = vmatpush3.bf16.msra.mxu1 %v6393_v29  ;;  %v975_v29 = vrot.slane %v973_v42, 5  ;;  %v981_v0 = vrot.slane %v979_v44, 5  ;;  %v963_v26 = vrot.slane %v962_v41, 4  ;;  %v5071_v54 = vrot.slane %v5063_v49, 9  ;;  %v4806_v49 = vld [vmem:[%s5996_s29 + $0x30] sm:$0xe] }
  0x72   : > { %5533 = vmatmul.mubr.msk.bf16.gmra.mrb[4].mxu0 %vm390_vm3, %v5056_v13  ;;  %5816 = vmatprep.subr.msk.bf16.mxu1 %vm403_vm0, %v6468_v31  ;;  %v954_v58 = vsel %vm6045_vm4, %v949_v28, %v953_v20  ;;  %v3184_v27 = vsel %vm6167_vm7, %v5069_v50, %v3183_v51  ;;  %v3188_v57 = vsel %vm6167_vm7, %v5070_v59, %v3187_v45  ;;  %v3191_v56 = vrot.slane %v6315_v17, 5  ;;  %v5067_v20 = vld [vmem:[%s5996_s29 + $0xd0] sm:$0xe]  ;;  %v4807_v28 = vld [vmem:[%s5996_s29 + $0x38] sm:$0xe] }
  0x73   : > { %v4795_v40 = vcombine.low %v940_v36, %v954_v58  ;;  %v976_v14 = vor.u32 %v975_v29, %v972_v7  ;;  %v968_v62 = vsel %vm6045_vm4, %v963_v26, %v967_v9  ;;  %v5078_v61 = vcombine.low %v3184_v27, %v3188_v57  ;;  %v4805_v36 = vld [vmem:[%s5996_s29 + $0x28] sm:$0xe]  ;;  %v5119_v7 = vld [vmem:[%s7045_s1 + $0x26] sm:$0x3]  ;;  %v4808_v29 = vld [vmem:[%s5996_s29 + $0x40] sm:$0xe] }
  0x74   : > { %v5072_v47 = vrot.slane %v5064_v10, 9  ;;  %v3195_v2 = vrot.slane %v6320_v12, 5  ;;  %v3192_v18 = vsel %vm6167_vm7, %v5071_v54, %v3191_v56  ;;  %v3361_v17 = vsel %vm403_vm0, %v6440_v63, 0  ;;  %v5877_v26 = vld [vmem:[%s5996_s29 + $0xa8] ss:$8 sps:$4 sm:$0xff]  }
  0x75   : > { %5412 = vmatprep.mubr.msk.bf16.mxu1 %vm390_vm3, %v4795_v40  ;;  %v977_v43 = vrot.slane %v976_v14, 4  ;;  %v4809_v60 = vrot.slane %v4801_v19, 9  ;;  %5538 = vmatprep.mubr.msk.bf16.mxu0 %vm390_vm3, %v5078_v61  ;;  %v1111_v12 = vrot.slane %v6335_v33, 5  ;;  %v4810_v8 = vrot.slane %v4802_v39, 9 }
  0x76   : > { %v3196_v35 = vsel %vm6167_vm7, %v5072_v47, %v3195_v2  ;;  %v1115_v34 = vrot.slane %v6348_v48, 5  ;;  %v4811_v21 = vrot.slane %v4803_v23, 9  ;;  %v1119_v32 = vrot.slane %v6358_v55, 5  ;;  %v4859_v23 = vld [vmem:[%s7045_s1 + $0xe] sm:$0x3] }
  0x77   : > { %v982_v63 = vsel %vm6045_vm4, %v977_v43, %v981_v0  ;;  %v5079_v13 = vcombine.low %v3192_v18, %v3196_v35  ;;  %v1112_v4 = vsel %vm6167_vm7, %v4809_v60, %v1111_v12  ;;  %v4812_v48 = vrot.slane %v4804_v5, 9  ;;  %v5105_v60 = vld [vmem:[%s5996_s29 + $0xb0] sm:$0xf]  ;;  %v6580_v35 = vld [vmem:[%s5996_s29 + $0xb4] sm:$0x1] }
  0x78   : > { %v4796_v9 = vcombine.low %v968_v62, %v982_v63  ;;  %v1116_v33 = vsel %vm6167_vm7, %v4810_v8, %v1115_v34  ;;  %v1120_v55 = vsel %vm6167_vm7, %v4811_v21, %v1119_v32  ;;  %v1123_v44 = vrot.slane %v6373_v22, 5  ;;  %v5879_v32 = vld [vmem:[%s5996_s29 + $0x10] ss:$8 sps:$4 sm:$0xff]  }
  0x79   : > { %v4818_v42 = vcombine.low %v1112_v4, %v1116_v33  ;;  %v5073_v41 = vrot.slane %v5065_v24, 9  ;;  %v3199_v50 = vrot.slane %v6385_v1, 5  ;;  %v5074_v51 = vrot.slane %v5066_v25, 9  ;;  %v5878_v25 = vld [vmem:[%s5996_s29 + $0xb8] ss:$8 sps:$4 sm:$0xff]  }
  0x7a   : > { %5539 = vmatmul.mubr.msk.bf16.vlgmr.msra.gmra.mrb[0].mxu0 %vm390_vm3, %v5079_v13  ;;  %5413 = vmatmul.mubr.msk.bf16.gmra.mrb[4].mxu1 %vm390_vm3, %v4796_v9  ;;  %v3203_v10 = vrot.slane %v6397_v53, 5  ;;  %v1124_v0 = vsel %vm6167_vm7, %v4812_v48, %v1123_v44  ;;  %v5075_v59 = vrot.slane %v5067_v20, 9  ;;  %v3207_v22 = vrot.slane %v6406_v11, 5  ;;  %v5144_v13 = vld [vmem:[%s7045_s1 + $0x28] sm:$0x3] }
  0x7b   : > { %5547 = vmatpush3.bf16.msra.mxu0 %v3361_v17  ;;  %5418 = vmatprep.mubr.msk.bf16.mxu1 %vm390_vm3, %v4818_v42  ;;  %v5076_v45 = vrot.slane %v5068_v30, 9  ;;  %v4819_v19 = vcombine.low %v1120_v55, %v1124_v0  ;;  %v3200_v58 = vsel %vm6167_vm7, %v5073_v41, %v3199_v50  ;;  %v3211_v53 = vrot.slane %v6418_v16, 5  ;;  %v6574_v17 = vld [vmem:[%s5996_s29 + $0xac] sm:$0x1]  ;;  %v5881_v9 = vld [vmem:[%s5996_s29 + $0xc8] ss:$8 sps:$4 sm:$0xff]  }
  0x7c   : > { %5830 = vmatprep.subr.msk.bf16.mxu0 %vm403_vm0, %v5119_v7  ;;  %v3204_v1 = vsel %vm6167_vm7, %v5074_v51, %v3203_v10  ;;  %v3208_v54 = vsel %vm6167_vm7, %v5075_v59, %v3207_v22  ;;  %v4813_v39 = vrot.slane %v4805_v36, 9  ;;  %v1127_v11 = vrot.slane %v6425_v6, 5  ;;  %v5107_v36 = vld [vmem:[%s5996_s29 + $0xb8] sm:$0xf]  ;;  %v5109_v50 = vld [vmem:[%s5996_s29 + $0xc0] sm:$0xf] }
  0x7d   : > { %v5080_v27 = vcombine.low %v3200_v58, %v3204_v1  ;;  %v3212_v40 = vsel %vm6167_vm7, %v5076_v45, %v3211_v53  ;;  %v4814_v14 = vrot.slane %v4806_v49, 9  ;;  %v1131_v57 = vrot.slane %v6433_v46, 5  ;;  %v6596_v49 = vld [vmem:[%s5996_s29 + $0xbc] sm:$0x1]  ;;  %v6600_v51 = vld [vmem:[%s5996_s29 + $0xc4] sm:$0x1] }
  0x7e   : > { %v4815_v56 = vrot.slane %v4807_v28, 9  ;;  %v5081_v16 = vcombine.low %v3208_v54, %v3212_v40  ;;  %v1128_v62 = vsel %vm6167_vm7, %v4813_v39, %v1127_v11  ;;  %v1135_v6 = vrot.slane %v6449_v52, 5  ;;  %v4845_v40 = vld [vmem:[%s5996_s29 + $0x18] sm:$0xf] }
  0x7f   : > { %5542 = vmatprep.mubr.msk.bf16.mxu0 %vm390_vm3, %v5080_v27  ;;  %v4816_v61 = vrot.slane %v4808_v29, 9  ;;  %v1290_v46 = vsel %vm403_vm0, %v6468_v31, 0  ;;  %v1132_v47 = vsel %vm6167_vm7, %v4814_v14, %v1131_v57  ;;  %v1139_v2 = vrot.slane %v6458_v37, 5  ;;  %v5103_v37 = vld [vmem:[%s5996_s29 + $0xa8] sm:$0xf] }
  0x80   : > { %v4820_v5 = vcombine.low %v1128_v62, %v1132_v47  ;;  %v1136_v43 = vsel %vm6167_vm7, %v4815_v56, %v1135_v6  ;;  %v3591_v18 = vsel %vm403_vm0, %v5119_v7, 0  ;;  %v6566_v52 = vsel %vm403_vm0, %v4859_v23, 0  ;;  %v6607_v27 = vld [vmem:[%s5996_s29 + $0x14] sm:$0x1]  ;;  %v5880_v6 = vld [vmem:[%s5996_s29 + $0x20] ss:$8 sps:$4 sm:$0xff]  }
  0x81   : > { %v1140_v31 = vsel %vm6167_vm7, %v4816_v61, %v1139_v2  ;;  %v3453_v12 = vshrl.u32 %v5103_v37, 16  ;;  %v3456_v8 = vshll.u32 %v5103_v37, 16  ;;  %v3462_v34 = vshll.u32 %v6574_v17, 16  ;;  %v5882_v61 = vld [vmem:[%s5996_s29 + $0xd8] ss:$8 sps:$4 sm:$0xff]  }
  0x82   : > { %5543 = vmatmul.mubr.msk.bf16.gmra.mrb[4].mxu0 %vm390_vm3, %v5081_v16  ;;  %5419 = vmatmul.mubr.msk.bf16.vlgmr.msra.gmra.mrb[0].mxu1 %vm390_vm3, %v4819_v19  ;;  %v4821_v24 = vcombine.low %v1136_v43, %v1140_v31  ;;  %v3467_v20 = vshrl.u32 %v5105_v60, 16  ;;  %v3470_v30 = vshll.u32 %v5105_v60, 16  ;;  %v3476_v63 = vshll.u32 %v6580_v35, 16  ;;  %v4843_v19 = vld [vmem:[%s5996_s29 + $0x10] sm:$0xf] }
  0x83   : > { %5548 = vmatprep.mubr.msk.bf16.mxu0 %vm390_vm3, %v5877_v26  ;;  %5427 = vmatpush3.bf16.msra.mxu1 %v1290_v46  ;;  %v3692_v21 = vrot.slane %v6574_v17, 5  ;;  %v3455_v4 = vrot.slane %v3453_v12, 4  ;;  %v3458_v33 = vrot.slane %v3456_v8, 5  ;;  %v3464_v48 = vrot.slane %v3462_v34, 5  ;;  %v6616_v16 = vld [vmem:[%s5996_s29 + $0x1c] sm:$0x1] }
  0x84   : > { %5422 = vmatprep.mubr.msk.bf16.mxu1 %vm390_vm3, %v4820_v5  ;;  %5817 = vmatprep.subr.msk.bf16.mxu1 %vm403_vm0, %v4859_v23  ;;  %v6593_v7 = vsel %vm403_vm0, %v5144_v13, 0  ;;  %v3469_v42 = vrot.slane %v3467_v20, 4  ;;  %v3472_v55 = vrot.slane %v3470_v30, 5  ;;  %v3478_v44 = vrot.slane %v3476_v63, 5  ;;  %v4847_v43 = vld [vmem:[%s5996_s29 + $0x20] sm:$0xf] }
  0x85   : > { %v3481_v28 = vshrl.u32 %v5107_v36, 16  ;;  %v3459_v41 = vor.u32 %v3458_v33, %v3455_v4  ;;  %v3484_v10 = vshll.u32 %v5107_v36, 16  ;;  %v3490_v29 = vshll.u32 %v6596_v49, 16  ;;  %v6628_v20 = vld [vmem:[%s5996_s29 + $0x24] sm:$0x1] }
  0x86   : > { %v3473_v0 = vor.u32 %v3472_v55, %v3469_v42  ;;  %v3495_v22 = vshrl.u32 %v5109_v50, 16  ;;  %v3498_v45 = vshll.u32 %v5109_v50, 16  ;;  %v3504_v26 = vshll.u32 %v6600_v51, 16  ;;  %v6639_v42 = vld [vmem:[%s5996_s29 + $0x2c] sm:$0x1] }
  0x87   : > { %v3483_v59 = vrot.slane %v3481_v28, 4  ;;  %v3460_v58 = vrot.slane %v3459_v41, 4  ;;  %v3486_v1 = vrot.slane %v3484_v10, 5  ;;  %v3492_v53 = vrot.slane %v3490_v29, 5  ;;  %v5111_v10 = vld [vmem:[%s5996_s29 + $0xc8] sm:$0xf] }
  0x88   : > { %v3474_v54 = vrot.slane %v3473_v0, 4  ;;  %v3497_v39 = vrot.slane %v3495_v22, 4  ;;  %v3500_v11 = vrot.slane %v3498_v45, 5  ;;  %v1382_v14 = vshrl.u32 %v4843_v19, 16  ;;  %v6647_v45 = vld [vmem:[%s5996_s29 + $0xcc] sm:$0x1] }
  0x89   : > { %v3465_v57 = vsel %vm6045_vm4, %v3460_v58, %v3464_v48  ;;  %v3487_v56 = vor.u32 %v3486_v1, %v3483_v59  ;;  %v3506_v23 = vrot.slane %v3504_v26, 5  ;;  %v1385_v62 = vshll.u32 %v4843_v19, 16  ;;  %v5113_v26 = vld [vmem:[%s5996_s29 + $0xd0] sm:$0xf] }
  0x8a   : > { %5549 = vmatmul.mubr.msk.bf16.vlgmr.msra.gmra.mrb[0].mxu0 %vm390_vm3, %v5878_v25  ;;  %5423 = vmatmul.mubr.msk.bf16.gmra.mrb[4].mxu1 %vm390_vm3, %v4821_v24  ;;  %v3479_v46 = vsel %vm6045_vm4, %v3474_v54, %v3478_v44  ;;  %v3501_v47 = vor.u32 %v3500_v11, %v3497_v39  ;;  %v1384_v2 = vrot.slane %v1382_v14, 4  ;;  %v1391_v5 = vshll.u32 %v6607_v27, 16  ;;  %v5884_v54 = vld [vmem:[%s5996_s29 + $0x40] ss:$8 sps:$4 sm:$0xff]  }
  0x8b   : > { %5557 = vmatpush3.bf16.msra.mxu0 %v3591_v18  ;;  %5428 = vmatprep.mubr.msk.bf16.mxu1 %vm390_vm3, %v5879_v32  ;;  %v5883_v18 = vld [vmem:[%s5996_s29 + $0x30] ss:$8 sps:$4 sm:$0xff]   ;;  %v5120_v31 = vcombine.low %v3465_v57, %v3479_v46  ;;  %v3488_v37 = vrot.slane %v3487_v56, 4  ;;  %v1387_v60 = vrot.slane %v1385_v62, 5  ;;  %v1396_v24 = vshrl.u32 %v4845_v40, 16 }
  0x8c   : > { %5552 = vmatprep.mubr.msk.bf16.mxu0 %vm390_vm3, %v5881_v9  ;;  %5831 = vmatprep.subr.msk.bf16.mxu0 %vm403_vm0, %v5144_v13  ;;  %v3502_v25 = vrot.slane %v3501_v47, 4  ;;  %v1393_v12 = vrot.slane %v1391_v5, 5  ;;  %v1399_v8 = vshll.u32 %v4845_v40, 16  ;;  %v1405_v34 = vshll.u32 %v6616_v16, 16  ;;  %v4884_v32 = vld [vmem:[%s7045_s1 + $0x10] sm:$0x3] }
  0x8d   : > { %v3493_v30 = vsel %vm6045_vm4, %v3488_v37, %v3492_v53  ;;  %v1388_v63 = vor.u32 %v1387_v60, %v1384_v2  ;;  %v1398_v13 = vrot.slane %v1396_v24, 4  ;;  %v4849_v9 = vld [vmem:[%s5996_s29 + $0x28] sm:$0xf]  ;;  %v1410_v4 = vshrl.u32 %v4847_v43, 16  ;;  %v6661_v57 = vld [vmem:[%s5996_s29 + $0xd4] sm:$0x1] }
  0x8e   : > { %v3507_v33 = vsel %vm6045_vm4, %v3502_v25, %v3506_v23  ;;  %v1401_v48 = vrot.slane %v1399_v8, 5  ;;  %v1407_v36 = vrot.slane %v1405_v34, 5  ;;  %v1413_v55 = vshll.u32 %v4847_v43, 16  ;;  %v5115_v2 = vld [vmem:[%s5996_s29 + $0xd8] sm:$0xf] }
  0x8f   : > { %v5121_v44 = vcombine.low %v3493_v30, %v3507_v33  ;;  %v1389_v28 = vrot.slane %v1388_v63, 4  ;;  %v1412_v41 = vrot.slane %v1410_v4, 4  ;;  %v1419_v50 = vshll.u32 %v6628_v20, 16  ;;  %v6668_v5 = vld [vmem:[%s5996_s29 + $0xdc] sm:$0x1] }
  0x90   : > { %v1402_v29 = vor.u32 %v1401_v48, %v1398_v13  ;;  %v1415_v0 = vrot.slane %v1413_v55, 5  ;;  %v1424_v59 = vshrl.u32 %v4849_v9, 16  ;;  %v1427_v22 = vshll.u32 %v4849_v9, 16  ;;  %v5117_v60 = vld [vmem:[%s5996_s29 + $0xe0] sm:$0xf] }
  0x91   : > { %v1394_v19 = vsel %vm6045_vm4, %v1389_v28, %v1393_v12  ;;  %v1421_v58 = vrot.slane %v1419_v50, 5  ;;  %v1433_v1 = vshll.u32 %v6639_v42, 16  ;;  %v6655_v53 = vsel %vm403_vm0, %v4884_v32, 0  ;;  %v6676_v63 = vld [vmem:[%s5996_s29 + $0xe4] sm:$0x1] }
  0x92   : > { %5553 = vmatmul.mubr.msk.bf16.gmra.mrb[4].mxu0 %vm390_vm3, %v5882_v61  ;;  %5429 = vmatmul.mubr.msk.bf16.vlgmr.msra.gmra.mrb[0].mxu1 %vm390_vm3, %v5880_v6  ;;  %v1403_v39 = vrot.slane %v1402_v29, 4  ;;  %v1416_v11 = vor.u32 %v1415_v0, %v1412_v41  ;;  %v1429_v40 = vrot.slane %v1427_v22, 5  ;;  %v3509_v56 = vshrl.u32 %v5111_v10, 16  ;;  %v6686_v50 = vld [vmem:[%s5996_s29 + $0x34] sm:$0x1] }
  0x93   : > { %5558 = vmatprep.mubr.msk.bf16.mxu0 %vm390_vm3, %v5120_v31  ;;  %5437 = vmatpush3.bf16.msra.mxu1 %v6566_v52  ;;  %v1426_v52 = vrot.slane %v1424_v59, 4  ;;  %v1435_v14 = vrot.slane %v1433_v1, 5  ;;  %v3512_v23 = vshll.u32 %v5111_v10, 16  ;;  %v3518_v62 = vshll.u32 %v6647_v45, 16  ;;  %v4853_v59 = vld [vmem:[%s5996_s29 + $0x38] sm:$0xf] }
  0x94   : > { %5432 = vmatprep.mubr.msk.bf16.mxu1 %vm390_vm3, %v5883_v18  ;;  %5818 = vmatprep.subr.msk.bf16.mxu1 %vm403_vm0, %v4884_v32  ;;  %v1408_v6 = vsel %vm6045_vm4, %v1403_v39, %v1407_v36  ;;  %v1417_v61 = vrot.slane %v1416_v11, 4  ;;  %v3523_v47 = vshrl.u32 %v5113_v26, 16  ;;  %v3511_v18 = vrot.slane %v3509_v56, 4  ;;  %v4851_v36 = vld [vmem:[%s5996_s29 + $0x30] sm:$0xf] }
  0x95   : > { %v1430_v46 = vor.u32 %v1429_v40, %v1426_v52  ;;  %v4860_v43 = vcombine.low %v1394_v19, %v1408_v6  ;;  %v3514_v31 = vrot.slane %v3512_v23, 5  ;;  %v3520_v37 = vrot.slane %v3518_v62, 5  ;;  %v6693_v1 = vld [vmem:[%s5996_s29 + $0x3c] sm:$0x1]  ;;  %v4855_v40 = vld [vmem:[%s5996_s29 + $0x40] sm:$0xf] }
  0x96   : > { %v1422_v24 = vsel %vm6045_vm4, %v1417_v61, %v1421_v58  ;;  %v3525_v12 = vrot.slane %v3523_v47, 4  ;;  %v3526_v8 = vshll.u32 %v5113_v26, 16  ;;  %v3532_v30 = vshll.u32 %v6661_v57, 16  ;;  %v6700_v6 = vld [vmem:[%s7045_s1 + $0x2a] sm:$0x3] }
  0x97   : > { %v1431_v25 = vrot.slane %v1430_v46, 4  ;;  %v3515_v34 = vor.u32 %v3514_v31, %v3511_v18  ;;  %v3537_v13 = vshrl.u32 %v5115_v2, 16  ;;  %v3540_v32 = vshll.u32 %v5115_v2, 16 }
  0x98   : > { %v3528_v4 = vrot.slane %v3526_v8, 5  ;;  %v3546_v33 = vshll.u32 %v6668_v5, 16  ;;  %v3551_v48 = vshrl.u32 %v5117_v60, 16  ;;  %v3534_v28 = vrot.slane %v3532_v30, 5  ;;  %v6717_v30 = vld [vmem:[%s7045_s1 + $0x12] sm:$0x3] }
  0x99   : > { %v1436_v9 = vsel %vm6045_vm4, %v1431_v25, %v1435_v14  ;;  %v3539_v41 = vrot.slane %v3537_v13, 4  ;;  %v3542_v10 = vrot.slane %v3540_v32, 5  ;;  %v3554_v19 = vshll.u32 %v5117_v60, 16 }
  0x9a   : > { %5559 = vmatmul.mubr.msk.bf16.vlgmr.msra.gmra.mrb[0].mxu0 %vm390_vm3, %v5121_v44  ;;  %5433 = vmatmul.mubr.msk.bf16.gmra.mrb[4].mxu1 %vm390_vm3, %v5884_v54  ;;  %v4861_v55 = vcombine.low %v1422_v24, %v1436_v9  ;;  %v3516_v44 = vrot.slane %v3515_v34, 4  ;;  %v3548_v29 = vrot.slane %v3546_v33, 5  ;;  %v3553_v0 = vrot.slane %v3551_v48, 4  ;;  %v4857_v24 = vld [vmem:[%s5996_s29 + $0x48] sm:$0xf] }
  0x9b   : > { %5567 = vmatpush3.bf16.msra.mxu0 %v6593_v7  ;;  %5438 = vmatprep.mubr.msk.bf16.mxu1 %vm390_vm3, %v4860_v43  ;;  %v3529_v7 = vor.u32 %v3528_v4, %v3525_v12  ;;  %v3560_v58 = vshll.u32 %v6676_v63, 16  ;;  %v1438_v26 = vshrl.u32 %v4851_v36, 16  ;;  %v3543_v39 = vor.u32 %v3542_v10, %v3539_v41  ;;  %v6705_v43 = vld [vmem:[%s5996_s29 + $0x44] sm:$0x1]  ;;  %v6722_v9 = vld [vmem:[%s5996_s29 + $0x4c] sm:$0x1] }
  0x9c   : > { %v3521_v22 = vsel %vm6045_vm4, %v3516_v44, %v3520_v37  ;;  %v1441_v11 = vshll.u32 %v4851_v36, 16  ;;  %v1447_v52 = vshll.u32 %v6686_v50, 16  ;;  %v3556_v14 = vrot.slane %v3554_v19, 5  ;;  %5832 = vmatprep.subr.msk.bf16.mxu0 %vm403_vm0, %v6700_v6 }
  0x9d   : > { %v3530_v54 = vrot.slane %v3529_v7, 4  ;;  %v3562_v56 = vrot.slane %v3560_v58, 5  ;;  %v1440_v23 = vrot.slane %v1438_v26, 4  ;;  %v1452_v62 = vshrl.u32 %v4853_v59, 16 }
  0x9e   : > { %v3544_v46 = vrot.slane %v3543_v39, 4  ;;  %v1443_v47 = vrot.slane %v1441_v11, 5  ;;  %v1449_v2 = vrot.slane %v1447_v52, 5  ;;  %v3557_v31 = vor.u32 %v3556_v14, %v3553_v0  ;;  %v5130_v0 = vld [vmem:[%s5996_s29 + $0xb8] sm:$0xe] }
  0x9f   : > { %v3535_v61 = vsel %vm6045_vm4, %v3530_v54, %v3534_v28  ;;  %v1454_v37 = vrot.slane %v1452_v62, 4  ;;  %v1455_v60 = vshll.u32 %v4853_v59, 16  ;;  %v1461_v8 = vshll.u32 %v6693_v1, 16  ;;  %v5128_v28 = vld [vmem:[%s5996_s29 + $0xa8] sm:$0xe] }
  0xa0   : > { %v5122_v18 = vcombine.low %v3521_v22, %v3535_v61  ;;  %v3549_v25 = vsel %vm6045_vm4, %v3544_v46, %v3548_v29  ;;  %v1444_v12 = vor.u32 %v1443_v47, %v1440_v23  ;;  %v1466_v34 = vshrl.u32 %v4855_v40, 16  ;;  %v5129_v29 = vld [vmem:[%s5996_s29 + $0xb0] sm:$0xe] }
  0xa1   : > { %v3558_v13 = vrot.slane %v3557_v31, 4  ;;  %v1457_v32 = vrot.slane %v1455_v60, 5  ;;  %v1469_v4 = vshll.u32 %v4855_v40, 16  ;;  %v1475_v33 = vshll.u32 %v6705_v43, 16 }
  0xa2   : > { %5439 = vmatmul.mubr.msk.bf16.vlgmr.msra.gmra.mrb[0].mxu1 %vm390_vm3, %v4861_v55  ;;  %5562 = vmatprep.mubr.msk.bf16.mxu0 %vm390_vm3, %v5122_v18  ;;  %v1445_v48 = vrot.slane %v1444_v12, 4  ;;  %v1463_v36 = vrot.slane %v1461_v8, 5  ;;  %v1468_v55 = vrot.slane %v1466_v34, 4  ;;  %v1480_v44 = vshrl.u32 %v4857_v24, 16  ;;  %v4869_v18 = vld [vmem:[%s5996_s29 + $0x18] sm:$0xe] }
  0xa3   : > { %5447 = vmatpush3.bf16.msra.mxu1 %v6655_v53  ;;  %v3563_v53 = vsel %vm6045_vm4, %v3558_v13, %v3562_v56  ;;  %v1458_v41 = vor.u32 %v1457_v32, %v1454_v37  ;;  %v1471_v7 = vrot.slane %v1469_v4, 5  ;;  %v1477_v10 = vrot.slane %v1475_v33, 5  ;;  %v5131_v56 = vld [vmem:[%s5996_s29 + $0xc0] sm:$0xe]  ;;  %v4871_v8 = vld [vmem:[%s5996_s29 + $0x28] sm:$0xe] }
  0xa4   : > { %5819 = vmatprep.subr.msk.bf16.mxu1 %vm403_vm0, %v6717_v30  ;;  %v5123_v59 = vcombine.low %v3549_v25, %v3563_v53  ;;  %v1450_v22 = vsel %vm6045_vm4, %v1445_v48, %v1449_v2  ;;  %v1482_v19 = vrot.slane %v1480_v44, 4  ;;  %v1483_v58 = vshll.u32 %v4857_v24, 16  ;;  %v4868_v2 = vld [vmem:[%s5996_s29 + $0x10] sm:$0xe]  ;;  %v5132_v4 = vld [vmem:[%s5996_s29 + $0xc8] sm:$0xe] }
  0xa5   : > { %v1459_v26 = vrot.slane %v1458_v41, 4  ;;  %v1472_v54 = vor.u32 %v1471_v7, %v1468_v55  ;;  %v1489_v39 = vshll.u32 %v6722_v9, 16  ;;  %v5136_v11 = vrot.slane %v5128_v28, 9  ;;  %v5133_v33 = vld [vmem:[%s5996_s29 + $0xd0] sm:$0xe] }
  0xa6   : > { %5563 = vmatmul.mubr.msk.bf16.gmra.mrb[4].mxu0 %vm390_vm3, %v5123_v59  ;;  %v1485_v52 = vrot.slane %v1483_v58, 5  ;;  %v5137_v40 = vrot.slane %v5129_v29, 9  ;;  %v3696_v14 = vrot.slane %v6580_v35, 5  ;;  %v5138_v23 = vrot.slane %v5130_v0, 9  ;;  %v5134_v44 = vld [vmem:[%s5996_s29 + $0xd8] sm:$0xe] }
  0xa7   : > { %v1464_v62 = vsel %vm6045_vm4, %v1459_v26, %v1463_v36  ;;  %v1473_v61 = vrot.slane %v1472_v54, 4  ;;  %v1491_v46 = vrot.slane %v1489_v39, 5  ;;  %v3693_v47 = vsel %vm6167_vm7, %v5136_v11, %v3692_v21  ;;  %v4870_v21 = vld [vmem:[%s5996_s29 + $0x20] sm:$0xe]  ;;  %v5186_v59 = vld [vmem:[%s7045_s1 + $0x2c] sm:$0x3] }
  0xa8   : > { %v4862_v31 = vcombine.low %v1450_v22, %v1464_v62  ;;  %v1486_v35 = vor.u32 %v1485_v52, %v1482_v19  ;;  %v3697_v37 = vsel %vm6167_vm7, %v5137_v40, %v3696_v14  ;;  %v3700_v60 = vrot.slane %v6596_v49, 5  ;;  %v5135_v7 = vld [vmem:[%s5996_s29 + $0xe0] sm:$0xe]  ;;  %v4873_v58 = vld [vmem:[%s5996_s29 + $0x38] sm:$0xe] }
  0xa9   : > { %v1478_v24 = vsel %vm6045_vm4, %v1473_v61, %v1477_v10  ;;  %v5145_v25 = vcombine.low %v3693_v47, %v3697_v37  ;;  %v5139_v12 = vrot.slane %v5131_v56, 9  ;;  %v3704_v17 = vrot.slane %v6600_v51, 5  ;;  %v4874_v26 = vld [vmem:[%s5996_s29 + $0x40] sm:$0xe] }
  0xaa   : > { %5442 = vmatprep.mubr.msk.bf16.mxu1 %vm390_vm3, %v4862_v31  ;;  %v1487_v34 = vrot.slane %v1486_v35, 4  ;;  %v3701_v13 = vsel %vm6167_vm7, %v5138_v23, %v3700_v60  ;;  %v3870_v49 = vsel %vm403_vm0, %v6700_v6, 0  ;;  %v4876_v32 = vrot.slane %v4868_v2, 9  ;;  %v4875_v23 = vld [vmem:[%s5996_s29 + $0x48] sm:$0xe] }
  0xab   : > { %5568 = vmatprep.mubr.msk.bf16.mxu0 %vm390_vm3, %v5145_v25  ;;  %v3705_v51 = vsel %vm6167_vm7, %v5139_v12, %v3704_v17  ;;  %v1621_v48 = vrot.slane %v6607_v27, 5  ;;  %v4877_v36 = vrot.slane %v4869_v18, 9  ;;  %v1625_v55 = vrot.slane %v6616_v16, 5  ;;  %v4872_v16 = vld [vmem:[%s5996_s29 + $0x30] sm:$0xe] }
  0xac   : > { %v1492_v28 = vsel %vm6045_vm4, %v1487_v34, %v1491_v46  ;;  %v5146_v6 = vcombine.low %v3701_v13, %v3705_v51  ;;  %v4878_v53 = vrot.slane %v4870_v21, 9  ;;  %v1629_v41 = vrot.slane %v6628_v20, 5  ;;  %v5885_v18 = vld [vmem:[%s5996_s29 + $0xf0] ss:$8 sps:$4 sm:$0xff]   ;;  %v5171_v13 = vld [vmem:[%s5996_s29 + $0xf4] sm:$0x1] }
  0xad   : > { %v4863_v10 = vcombine.low %v1478_v24, %v1492_v28  ;;  %v1622_v29 = vsel %vm6167_vm7, %v4876_v32, %v1621_v48  ;;  %v1626_v27 = vsel %vm6167_vm7, %v4877_v36, %v1625_v55  ;;  %v4879_v0 = vrot.slane %v4871_v8, 9  ;;  %v4926_v8 = vld [vmem:[%s7045_s1 + $0x14] sm:$0x3]  ;;  %v5170_v34 = vld [vmem:[%s5996_s29 + $0xf0] sm:$0xf] }
  0xae   : > { %5569 = vmatmul.mubr.msk.bf16.vlgmr.msra.gmra.mrb[0].mxu0 %vm390_vm3, %v5146_v6  ;;  %v4885_v22 = vcombine.low %v1622_v29, %v1626_v27  ;;  %v1630_v20 = vsel %vm6167_vm7, %v4878_v53, %v1629_v41  ;;  %v1633_v19 = vrot.slane %v6639_v42, 5  ;;  %v5140_v54 = vrot.slane %v5132_v4, 9  ;;  %v5173_v32 = vld [vmem:[%s5996_s29 + $0xfc] sm:$0x1]  ;;  %v5886_v51 = vld [vmem:[%s5996_s29 + $0x100] ss:$8 sps:$4 sm:$0xff]  }
  0xaf   : > { %5443 = vmatmul.mubr.msk.bf16.gmra.mrb[4].mxu1 %vm390_vm3, %v4863_v10  ;;  %5577 = vmatpush3.bf16.msra.mxu0 %v3870_v49  ;;  %v3708_v39 = vrot.slane %v6647_v45, 5  ;;  %v5141_v11 = vrot.slane %v5133_v33, 9  ;;  %v3712_v52 = vrot.slane %v6661_v57, 5  ;;  %v5142_v14 = vrot.slane %v5134_v44, 9  ;;  %v5172_v49 = vld [vmem:[%s5996_s29 + $0xf8] sm:$0xf] }
  0xb0   : > { %5448 = vmatprep.mubr.msk.bf16.mxu1 %vm390_vm3, %v4885_v22  ;;  %v1634_v40 = vsel %vm6167_vm7, %v4879_v0, %v1633_v19  ;;  %v3716_v42 = vrot.slane %v6668_v5, 5  ;;  %v5143_v56 = vrot.slane %v5135_v7, 9  ;;  %5833 = vmatprep.subr.msk.bf16.mxu0 %vm403_vm0, %v5186_v59  ;;  %v3720_v61 = vrot.slane %v6676_v63, 5  ;;  %v5887_v28 = vld [vmem:[%s5996_s29 + $0x50] ss:$8 sps:$4 sm:$0xff]  }
  0xb1   : > { %v4886_v62 = vcombine.low %v1630_v20, %v1634_v40  ;;  %v3709_v45 = vsel %vm6167_vm7, %v5140_v54, %v3708_v39  ;;  %v3713_v57 = vsel %vm6167_vm7, %v5141_v11, %v3712_v52  ;;  %v4880_v2 = vrot.slane %v4872_v16, 9  ;;  %v5889_v6 = vld [vmem:[%s5996_s29 + $0x110] ss:$8 sps:$4 sm:$0xff]   ;;  %v5174_v7 = vld [vmem:[%s5996_s29 + $0x100] sm:$0xf] }
  0xb2   : > { %v5147_v46 = vcombine.low %v3709_v45, %v3713_v57  ;;  %v3717_v47 = vsel %vm6167_vm7, %v5142_v14, %v3716_v42  ;;  %v1637_v5 = vrot.slane %v6686_v50, 5  ;;  %v3721_v31 = vsel %vm6167_vm7, %v5143_v56, %v3720_v61  ;;  %v5175_v10 = vld [vmem:[%s5996_s29 + $0x104] sm:$0x1]  ;;  %v5203_v20 = vld [vmem:[%s7045_s1 + $0x2e] sm:$0x3] }
  0xb3   : > { %v4881_v35 = vrot.slane %v4873_v58, 9  ;;  %v1641_v37 = vrot.slane %v6693_v1, 5  ;;  %v4882_v60 = vrot.slane %v4874_v26, 9  ;;  %v5148_v24 = vcombine.low %v3717_v47, %v3721_v31  ;;  %v5177_v19 = vld [vmem:[%s5996_s29 + $0x10c] sm:$0x1] }
  0xb4   : > { %5572 = vmatprep.mubr.msk.bf16.mxu0 %vm390_vm3, %v5147_v46  ;;  %v1638_v63 = vsel %vm6167_vm7, %v4880_v2, %v1637_v5  ;;  %v1645_v25 = vrot.slane %v6705_v43, 5  ;;  %v4883_v12 = vrot.slane %v4875_v23, 9  ;;  %v1799_v50 = vsel %vm403_vm0, %v6717_v30, 0  ;;  %v4910_v14 = vld [vmem:[%s5996_s29 + $0x50] sm:$0xf] }
  0xb5   : > { %v1642_v1 = vsel %vm6167_vm7, %v4881_v35, %v1641_v37  ;;  %v1649_v17 = vrot.slane %v6722_v9, 5  ;;  %v4100_v9 = vsel %vm403_vm0, %v5186_v59, 0  ;;  %v3962_v4 = vshrl.u32 %v5170_v34, 16  ;;  %v5176_v59 = vld [vmem:[%s5996_s29 + $0x108] sm:$0xf] }
  0xb6   : > { %5573 = vmatmul.mubr.msk.bf16.gmra.mrb[4].mxu0 %vm390_vm3, %v5148_v24  ;;  %v4887_v21 = vcombine.low %v1638_v63, %v1642_v1  ;;  %v1646_v43 = vsel %vm6167_vm7, %v4882_v60, %v1645_v25  ;;  %v3965_v33 = vshll.u32 %v5170_v34, 16  ;;  %v3971_v15 = vshll.u32 %v5171_v13, 16  ;;  %v4911_v45 = vld [vmem:[%s5996_s29 + $0x54] sm:$0x1]  ;;  %v4912_v2 = vld [vmem:[%s5996_s29 + $0x58] sm:$0xf] }
  0xb7   : > { %5449 = vmatmul.mubr.msk.bf16.vlgmr.msra.gmra.mrb[0].mxu1 %vm390_vm3, %v4886_v62  ;;  %v1650_v30 = vsel %vm6167_vm7, %v4883_v12, %v1649_v17  ;;  %5578 = vmatprep.mubr.msk.bf16.mxu0 %vm390_vm3, %v5885_v18  ;;  %v3976_v48 = vshrl.u32 %v5172_v49, 16  ;;  %v3979_v36 = vshll.u32 %v5172_v49, 16  ;;  %v3985_v55 = vshll.u32 %v5173_v32, 16  ;;  %v5890_v5 = vld [vmem:[%s5996_s29 + $0x120] ss:$8 sps:$4 sm:$0xff]  }
  0xb8   : > { %5457 = vmatpush3.bf16.msra.mxu1 %v1799_v50  ;;  %5452 = vmatprep.mubr.msk.bf16.mxu1 %vm390_vm3, %v4887_v21  ;;  %v4888_v44 = vcombine.low %v1646_v43, %v1650_v30  ;;  %v3964_v53 = vrot.slane %v3962_v4, 4  ;;  %v3967_v41 = vrot.slane %v3965_v33, 5  ;;  %v3973_v29 = vrot.slane %v3971_v15, 5  ;;  %v5888_v60 = vld [vmem:[%s5996_s29 + $0x60] ss:$8 sps:$4 sm:$0xff]  }
  0xb9   : > { %5820 = vmatprep.subr.msk.bf16.mxu1 %vm403_vm0, %v4926_v8  ;;  %v3978_v27 = vrot.slane %v3976_v48, 4  ;;  %v3981_v0 = vrot.slane %v3979_v36, 5  ;;  %v3987_v16 = vrot.slane %v3985_v55, 5  ;;  %v3990_v58 = vshrl.u32 %v5174_v7, 16  ;;  %v4913_v25 = vld [vmem:[%s5996_s29 + $0x5c] sm:$0x1] }
  0xba   : > { %v3968_v22 = vor.u32 %v3967_v41, %v3964_v53  ;;  %v3993_v26 = vshll.u32 %v5174_v7, 16  ;;  %v3999_v54 = vshll.u32 %v5175_v10, 16  ;;  %v4004_v11 = vshrl.u32 %v5176_v59, 16  ;;  %v4914_v1 = vld [vmem:[%s5996_s29 + $0x60] sm:$0xf] }
  0xbb   : > { %v3982_v39 = vor.u32 %v3981_v0, %v3978_v27  ;;  %v4007_v52 = vshll.u32 %v5176_v59, 16  ;;  %v4013_v40 = vshll.u32 %v5177_v19, 16  ;;  %v2029_v42 = vsel %vm403_vm0, %v4926_v8, 0  ;;  %v5891_v17 = vld [vmem:[%s5996_s29 + $0x70] ss:$8 sps:$4 sm:$0xff]  }
  0xbc   : > { %v3969_v56 = vrot.slane %v3968_v22, 4  ;;  %v3992_v23 = vrot.slane %v3990_v58, 4  ;;  %v3995_v62 = vrot.slane %v3993_v26, 5  ;;  %v4001_v61 = vrot.slane %v3999_v54, 5  ;;  %v4915_v32 = vld [vmem:[%s5996_s29 + $0x64] sm:$0x1] }
  0xbd   : > { %v3983_v57 = vrot.slane %v3982_v39, 4  ;;  %v4006_v46 = vrot.slane %v4004_v11, 4  ;;  %v4009_v47 = vrot.slane %v4007_v52, 5  ;;  %v4015_v35 = vrot.slane %v4013_v40, 5  ;;  %v4916_v15 = vld [vmem:[%s5996_s29 + $0x68] sm:$0xf] }
  0xbe   : > { %5579 = vmatmul.mubr.msk.bf16.vlgmr.msra.gmra.mrb[0].mxu0 %vm390_vm3, %v5886_v51  ;;  %v3974_v18 = vsel %vm6045_vm4, %v3969_v56, %v3973_v29  ;;  %v3996_v31 = vor.u32 %v3995_v62, %v3992_v23  ;;  %v1891_v37 = vshrl.u32 %v4910_v14, 16  ;;  %v1894_v12 = vshll.u32 %v4910_v14, 16  ;;  %v5178_v27 = vld [vmem:[%s5996_s29 + $0x110] sm:$0xf]  ;;  %v5179_v19 = vld [vmem:[%s5996_s29 + $0x114] sm:$0x1] }
  0xbf   : > { %5453 = vmatmul.mubr.msk.bf16.gmra.mrb[4].mxu1 %vm390_vm3, %v4888_v44  ;;  %5587 = vmatpush3.bf16.msra.mxu0 %v4100_v9  ;;  %v3988_v24 = vsel %vm6045_vm4, %v3983_v57, %v3987_v16  ;;  %v4010_v63 = vor.u32 %v4009_v47, %v4006_v46  ;;  %v1900_v50 = vshll.u32 %v4911_v45, 16  ;;  %v1905_v30 = vshrl.u32 %v4912_v2, 16  ;;  %v5180_v39 = vld [vmem:[%s5996_s29 + $0x118] sm:$0xf]  ;;  %v5892_v11 = vld [vmem:[%s5996_s29 + $0x80] ss:$8 sps:$4 sm:$0xff]  }
  0xc0   : > { %5458 = vmatprep.mubr.msk.bf16.mxu1 %vm390_vm3, %v5887_v28  ;;  %5582 = vmatprep.mubr.msk.bf16.mxu0 %vm390_vm3, %v5889_v6  ;;  %v5187_v21 = vcombine.low %v3974_v18, %v3988_v24  ;;  %v3997_v8 = vrot.slane %v3996_v31, 4  ;;  %v1893_v43 = vrot.slane %v1891_v37, 4  ;;  %v1896_v34 = vrot.slane %v1894_v12, 5  ;;  %v4943_v28 = vld [vmem:[%s7045_s1 + $0x16] sm:$0x3] }
  0xc1   : > { %5834 = vmatprep.subr.msk.bf16.mxu0 %vm403_vm0, %v5203_v20  ;;  %v4011_v9 = vrot.slane %v4010_v63, 4  ;;  %v1902_v13 = vrot.slane %v1900_v50, 5  ;;  %v1908_v49 = vshll.u32 %v4912_v2, 16  ;;  %v1907_v33 = vrot.slane %v1905_v30, 4  ;;  %v4917_v6 = vld [vmem:[%s5996_s29 + $0x6c] sm:$0x1] }
  0xc2   : > { %v4002_v4 = vsel %vm6045_vm4, %v3997_v8, %v4001_v61  ;;  %v1914_v51 = vshll.u32 %v4913_v25, 16  ;;  %v1919_v48 = vshrl.u32 %v4914_v1, 16  ;;  %v1897_v55 = vor.u32 %v1896_v34, %v1893_v43  ;;  %v5181_v62 = vld [vmem:[%s5996_s29 + $0x11c] sm:$0x1]  ;;  %v5184_v24 = vld [vmem:[%s5996_s29 + $0x128] sm:$0xf] }
  0xc3   : > { %v4016_v36 = vsel %vm6045_vm4, %v4011_v9, %v4015_v35  ;;  %v1910_v44 = vrot.slane %v1908_v49, 5  ;;  %v1922_v53 = vshll.u32 %v4914_v1, 16  ;;  %v4221_v41 = vsel %vm403_vm0, %v5203_v20, 0  ;;  %v5185_v1 = vld [vmem:[%s5996_s29 + $0x12c] sm:$0x1] }
  0xc4   : > { %v1916_v7 = vrot.slane %v1914_v51, 5  ;;  %v1921_v10 = vrot.slane %v1919_v48, 4  ;;  %v1928_v29 = vshll.u32 %v4915_v32, 16  ;;  %v1898_v0 = vrot.slane %v1897_v55, 4  ;;  %v4918_v30 = vld [vmem:[%s5996_s29 + $0x70] sm:$0xf] }
  0xc5   : > { %v1911_v16 = vor.u32 %v1910_v44, %v1907_v33  ;;  %v1924_v59 = vrot.slane %v1922_v53, 5  ;;  %v1933_v22 = vshrl.u32 %v4916_v15, 16  ;;  %v5188_v20 = vcombine.low %v4002_v4, %v4016_v36  ;;  %v4919_v32 = vld [vmem:[%s5996_s29 + $0x74] sm:$0x1]  ;;  %v4920_v48 = vld [vmem:[%s5996_s29 + $0x78] sm:$0xf] }
  0xc6   : > { %5583 = vmatmul.mubr.msk.bf16.gmra.mrb[4].mxu0 %vm390_vm3, %v5890_v5  ;;  %v1930_v58 = vrot.slane %v1928_v29, 5  ;;  %v1936_v26 = vshll.u32 %v4916_v15, 16  ;;  %v1942_v54 = vshll.u32 %v4917_v6, 16  ;;  %v1903_v52 = vsel %vm6045_vm4, %v1898_v0, %v1902_v13  ;;  %v5182_v5 = vld [vmem:[%s5996_s29 + $0x120] sm:$0xf] }
  0xc7   : > { %5459 = vmatmul.mubr.msk.bf16.vlgmr.msra.gmra.mrb[0].mxu1 %vm390_vm3, %v5888_v60  ;;  %5588 = vmatprep.mubr.msk.bf16.mxu0 %vm390_vm3, %v5187_v21  ;;  %v1912_v40 = vrot.slane %v1911_v16, 4  ;;  %v1925_v14 = vor.u32 %v1924_v59, %v1921_v10  ;;  %v1935_v56 = vrot.slane %v1933_v22, 4  ;;  %v4018_v45 = vshrl.u32 %v5178_v27, 16  ;;  %v5183_v60 = vld [vmem:[%s5996_s29 + $0x124] sm:$0x1] }
  0xc8   : > { %5467 = vmatpush3.bf16.msra.mxu1 %v2029_v42  ;;  %5462 = vmatprep.mubr.msk.bf16.mxu1 %vm390_vm3, %v5891_v17  ;;  %v1938_v42 = vrot.slane %v1936_v26, 5  ;;  %v1944_v23 = vrot.slane %v1942_v54, 5  ;;  %v4021_v57 = vshll.u32 %v5178_v27, 16  ;;  %v4027_v47 = vshll.u32 %v5179_v19, 16  ;;  %v4921_v10 = vld [vmem:[%s5996_s29 + $0x7c] sm:$0x1] }
  0xc9   : > { %5821 = vmatprep.subr.msk.bf16.mxu1 %vm403_vm0, %v4943_v28  ;;  %v1917_v61 = vsel %vm6045_vm4, %v1912_v40, %v1916_v7  ;;  %v1926_v46 = vrot.slane %v1925_v14, 4  ;;  %v4032_v2 = vshrl.u32 %v5180_v39, 16  ;;  %v4020_v35 = vrot.slane %v4018_v45, 4  ;;  %v4922_v59 = vld [vmem:[%s5996_s29 + $0x80] sm:$0xf] }
  0xca   : > { %v4927_v18 = vcombine.low %v1903_v52, %v1917_v61  ;;  %v1939_v31 = vor.u32 %v1938_v42, %v1935_v56  ;;  %v4023_v37 = vrot.slane %v4021_v57, 5  ;;  %v4029_v25 = vrot.slane %v4027_v47, 5  ;;  %v6907_v22 = vld [vmem:[%s7045_s1 + $0x30] sm:$0x3]  ;;  %v4923_v54 = vld [vmem:[%s5996_s29 + $0x84] sm:$0x1] }
  0xcb   : > { %v1931_v63 = vsel %vm6045_vm4, %v1926_v46, %v1930_v58  ;;  %v4034_v12 = vrot.slane %v4032_v2, 4  ;;  %v4035_v50 = vshll.u32 %v5180_v39, 16  ;;  %v4041_v8 = vshll.u32 %v5181_v62, 16  ;;  %v4924_v62 = vld [vmem:[%s5996_s29 + $0x88] sm:$0xf] }
  0xcc   : > { %v1940_v17 = vrot.slane %v1939_v31, 4  ;;  %v4024_v21 = vor.u32 %v4023_v37, %v4020_v35  ;;  %v4046_v43 = vshrl.u32 %v5182_v5, 16  ;;  %v2150_v9 = vsel %vm403_vm0, %v4943_v28, 0  ;;  %v4925_v47 = vld [vmem:[%s5996_s29 + $0x8c] sm:$0x1] }
  0xcd   : > { %v4037_v34 = vrot.slane %v4035_v50, 5  ;;  %v4049_v13 = vshll.u32 %v5182_v5, 16  ;;  %v4060_v49 = vshrl.u32 %v5184_v24, 16  ;;  %v4055_v15 = vshll.u32 %v5183_v60, 16 }
  0xce   : > { %5589 = vmatmul.mubr.msk.bf16.vlgmr.msra.gmra.mrb[0].mxu0 %vm390_vm3, %v5188_v20  ;;  %v1945_v4 = vsel %vm6045_vm4, %v1940_v17, %v1944_v23  ;;  %v4025_v33 = vrot.slane %v4024_v21, 4  ;;  %v4048_v51 = vrot.slane %v4046_v43, 4  ;;  %v4043_v44 = vrot.slane %v4041_v8, 5 }
  0xcf   : > { %5463 = vmatmul.mubr.msk.bf16.gmra.mrb[4].mxu1 %vm390_vm3, %v5892_v11  ;;  %5597 = vmatpush3.bf16.msra.mxu0 %v4221_v41  ;;  %v4928_v36 = vcombine.low %v1931_v63, %v1945_v4  ;;  %v4038_v55 = vor.u32 %v4037_v34, %v4034_v12  ;;  %v4051_v6 = vrot.slane %v4049_v13, 5  ;;  %v4062_v53 = vrot.slane %v4060_v49, 4  ;;  %v5901_v63 = vld [vmem:[%s7045_s1 + $0x18] sm:$0x3] }
  0xd0   : > { %5468 = vmatprep.mubr.msk.bf16.mxu1 %vm390_vm3, %v4927_v18  ;;  %v4030_v28 = vsel %vm6045_vm4, %v4025_v33, %v4029_v25  ;;  %v4063_v41 = vshll.u32 %v5184_v24, 16  ;;  %v4069_v7 = vshll.u32 %v5185_v1, 16  ;;  %v1947_v0 = vshrl.u32 %v4918_v30, 16  ;;  %5835 = vmatprep.subr.msk.bf16.mxu0 %vm403_vm0, %v6907_v22  ;;  %v5893_v1 = vld [vmem:[%s5996_s29 + $0xf8] ss:$8 sps:$4 sm:$0xff]  }
  0xd1   : > { %v4039_v29 = vrot.slane %v4038_v55, 4  ;;  %v4052_v27 = vor.u32 %v4051_v6, %v4048_v51  ;;  %v1950_v16 = vshll.u32 %v4918_v30, 16  ;;  %v4057_v19 = vrot.slane %v4055_v15, 5  ;;  %v5894_v15 = vld [vmem:[%s5996_s29 + $0x108] ss:$8 sps:$4 sm:$0xff]  }
  0xd2   : > { %v4065_v20 = vrot.slane %v4063_v41, 5  ;;  %v1956_v58 = vshll.u32 %v4919_v32, 16  ;;  %v1961_v26 = vshrl.u32 %v4920_v48, 16  ;;  %v1949_v52 = vrot.slane %v1947_v0, 4  ;;  %v5214_v41 = vld [vmem:[%s5996_s29 + $0x100] sm:$0xf] }
  0xd3   : > { %v4044_v39 = vsel %vm6045_vm4, %v4039_v29, %v4043_v44  ;;  %v4053_v11 = vrot.slane %v4052_v27, 4  ;;  %v1952_v40 = vrot.slane %v1950_v16, 5  ;;  %v4071_v42 = vrot.slane %v4069_v7, 5  ;;  %v5897_v44 = vld [vmem:[%s5996_s29 + $0x118] ss:$8 sps:$4 sm:$0xff]  }
  0xd4   : > { %v5189_v14 = vcombine.low %v4030_v28, %v4044_v39  ;;  %v4066_v56 = vor.u32 %v4065_v20, %v4062_v53  ;;  %v1958_v23 = vrot.slane %v1956_v58, 5  ;;  %v1963_v57 = vrot.slane %v1961_v26, 4  ;;  %v5212_v28 = vld [vmem:[%s5996_s29 + $0xf8] sm:$0xf]  ;;  %v5213_v53 = vld [vmem:[%s5996_s29 + $0xfc] sm:$0x1] }
  0xd5   : > { %v1953_v45 = vor.u32 %v1952_v40, %v1949_v52  ;;  %v1964_v61 = vshll.u32 %v4920_v48, 16  ;;  %v1970_v46 = vshll.u32 %v4921_v10, 16  ;;  %v4058_v2 = vsel %vm6045_vm4, %v4053_v11, %v4057_v19  ;;  %v5895_v10 = vld [vmem:[%s5996_s29 + $0x58] ss:$8 sps:$4 sm:$0xff]   ;;  %v5215_v29 = vld [vmem:[%s5996_s29 + $0x104] sm:$0x1] }
  0xd6   : > { %5592 = vmatprep.mubr.msk.bf16.mxu0 %vm390_vm3, %v5189_v14  ;;  %v4067_v5 = vrot.slane %v4066_v56, 4  ;;  %v1975_v18 = vshrl.u32 %v4922_v59, 16  ;;  %v1978_v31 = vshll.u32 %v4922_v59, 16  ;;  %v1984_v60 = vshll.u32 %v4923_v54, 16  ;;  %v5216_v26 = vld [vmem:[%s5996_s29 + $0x108] sm:$0xf] }
  0xd7   : > { %5469 = vmatmul.mubr.msk.bf16.vlgmr.msra.gmra.mrb[0].mxu1 %vm390_vm3, %v4928_v36  ;;  %v1954_v35 = vrot.slane %v1953_v45, 4  ;;  %v1966_v37 = vrot.slane %v1964_v61, 5  ;;  %v1989_v24 = vshrl.u32 %v4924_v62, 16  ;;  %v1972_v8 = vrot.slane %v1970_v46, 5  ;;  %v5217_v40 = vld [vmem:[%s5996_s29 + $0x10c] sm:$0x1] }
  0xd8   : > { %5477 = vmatpush3.bf16.msra.mxu1 %v2150_v9  ;;  %v4072_v25 = vsel %vm6045_vm4, %v4067_v5, %v4071_v42  ;;  %v1977_v12 = vrot.slane %v1975_v18, 4  ;;  %v1980_v50 = vrot.slane %v1978_v31, 5  ;;  %v1992_v9 = vshll.u32 %v4924_v62, 16  ;;  %v5219_v45 = vld [vmem:[%s5996_s29 + $0x114] sm:$0x1] }
  0xd9   : > { %5823 = vmatprep.subr.msk.bf16.mxu1 %vm403_vm0, %v5901_v63  ;;  %v5190_v17 = vcombine.low %v4058_v2, %v4072_v25  ;;  %v1967_v21 = vor.u32 %v1966_v37, %v1963_v57  ;;  %v1991_v30 = vrot.slane %v1989_v24, 4  ;;  %v1998_v34 = vshll.u32 %v4925_v47, 16  ;;  %v5898_v47 = vld [vmem:[%s5996_s29 + $0x128] ss:$8 sps:$4 sm:$0xff]   ;;  %v4961_v25 = vld [vmem:[%s5996_s29 + $0x7c] sm:$0x1] }
  0xda   : > { %v1981_v43 = vor.u32 %v1980_v50, %v1977_v12  ;;  %v1959_v13 = vsel %vm6045_vm4, %v1954_v35, %v1958_v23  ;;  %v1986_v32 = vrot.slane %v1984_v60, 5  ;;  %v1994_v33 = vrot.slane %v1992_v9, 5  ;;  %v5218_v23 = vld [vmem:[%s5996_s29 + $0x110] sm:$0xf]  ;;  %v4960_v35 = vld [vmem:[%s5996_s29 + $0x78] sm:$0xf] }
  0xdb   : > { %5593 = vmatmul.mubr.msk.bf16.gmra.mrb[4].mxu0 %vm390_vm3, %v5190_v17  ;;  %v1968_v49 = vrot.slane %v1967_v21, 4  ;;  %v2000_v55 = vrot.slane %v1998_v34, 5  ;;  %v4313_v27 = vshrl.u32 %v5212_v28, 16  ;;  %v4316_v0 = vshll.u32 %v5212_v28, 16  ;;  %v4962_v21 = vld [vmem:[%s5996_s29 + $0x80] sm:$0xf] }
  0xdc   : > { %v1982_v4 = vrot.slane %v1981_v43, 4  ;;  %5598 = vmatprep.mubr.msk.bf16.mxu0 %vm390_vm3, %v5893_v1  ;;  %v1995_v36 = vor.u32 %v1994_v33, %v1991_v30  ;;  %v4322_v16 = vshll.u32 %v5213_v53, 16  ;;  %v4451_v59 = vsel %vm403_vm0, %v6907_v22, 0  ;;  %v5899_v43 = vld [vmem:[%s5996_s29 + $0x78] ss:$8 sps:$4 sm:$0xff]  }
  0xdd   : > { %v1973_v51 = vsel %vm6045_vm4, %v1968_v49, %v1972_v8  ;;  %v4327_v19 = vshrl.u32 %v5214_v41, 16  ;;  %v4330_v20 = vshll.u32 %v5214_v41, 16  ;;  %v4336_v58 = vshll.u32 %v5215_v29, 16  ;;  %v5896_v8 = vld [vmem:[%s5996_s29 + $0x68] ss:$8 sps:$4 sm:$0xff]  }
  0xde   : > { %v4929_v48 = vcombine.low %v1959_v13, %v1973_v51  ;;  %v1987_v6 = vsel %vm6045_vm4, %v1982_v4, %v1986_v32  ;;  %v1996_v7 = vrot.slane %v1995_v36, 4  ;;  %v4315_v39 = vrot.slane %v4313_v27, 4  ;;  %v4963_v4 = vld [vmem:[%s5996_s29 + $0x84] sm:$0x1] }
  0xdf   : > { %v4318_v11 = vrot.slane %v4316_v0, 5  ;;  %v4324_v52 = vrot.slane %v4322_v16, 5  ;;  %v4329_v56 = vrot.slane %v4327_v19, 4  ;;  %v4332_v42 = vrot.slane %v4330_v20, 5  ;;  %v5222_v0 = vld [vmem:[%s5996_s29 + $0x120] sm:$0xf] }
  0xe0   : > { %5472 = vmatprep.mubr.msk.bf16.mxu1 %vm390_vm3, %v4929_v48  ;;  %v2001_v54 = vsel %vm6045_vm4, %v1996_v7, %v2000_v55  ;;  %v4338_v22 = vrot.slane %v4336_v58, 5  ;;  %v4341_v57 = vshrl.u32 %v5216_v26, 16  ;;  %v4344_v61 = vshll.u32 %v5216_v26, 16  ;;  %v5223_v16 = vld [vmem:[%s5996_s29 + $0x124] sm:$0x1] }
  0xe1   : > { %v4930_v14 = vcombine.low %v1987_v6, %v2001_v54  ;;  %v4319_v62 = vor.u32 %v4318_v11, %v4315_v39  ;;  %v4350_v46 = vshll.u32 %v5217_v40, 16  ;;  %v4333_v2 = vor.u32 %v4332_v42, %v4329_v56  ;;  %v5221_v6 = vld [vmem:[%s5996_s29 + $0x11c] sm:$0x1]  ;;  %v4964_v54 = vld [vmem:[%s5996_s29 + $0x88] sm:$0xf] }
  0xe2   : > { %v4355_v5 = vshrl.u32 %v5218_v23, 16  ;;  %v4358_v18 = vshll.u32 %v5218_v23, 16  ;;  %v4364_v31 = vshll.u32 %v5219_v45, 16  ;;  %v4343_v60 = vrot.slane %v4341_v57, 4  ;;  %v4965_v23 = vld [vmem:[%s5996_s29 + $0x8c] sm:$0x1] }
  0xe3   : > { %5599 = vmatmul.mubr.msk.bf16.vlgmr.msra.gmra.mrb[0].mxu0 %vm390_vm3, %v5894_v15  ;;  %5473 = vmatmul.mubr.msk.bf16.gmra.mrb[4].mxu1 %vm390_vm3, %v4930_v14  ;;  %v4320_v37 = vrot.slane %v4319_v62, 4  ;;  %v4346_v24 = vrot.slane %v4344_v61, 5  ;;  %v4352_v63 = vrot.slane %v4350_v46, 5  ;;  %v4334_v12 = vrot.slane %v4333_v2, 4  ;;  %v5220_v15 = vld [vmem:[%s5996_s29 + $0x118] sm:$0xf] }
  0xe4   : > { %5607 = vmatpush3.bf16.msra.mxu0 %v4451_v59  ;;  %5602 = vmatprep.mubr.msk.bf16.mxu0 %vm390_vm3, %v5897_v44  ;;  %v4357_v50 = vrot.slane %v4355_v5, 4  ;;  %v4360_v1 = vrot.slane %v4358_v18, 5  ;;  %v4366_v17 = vrot.slane %v4364_v31, 5  ;;  %v2298_v34 = vshrl.u32 %v4960_v35, 16  ;;  %v4966_v61 = vld [vmem:[%s5996_s29 + $0x90] sm:$0xf] }
  0xe5   : > { %5478 = vmatprep.mubr.msk.bf16.mxu1 %vm390_vm3, %v5895_v10  ;;  %v4325_v30 = vsel %vm6045_vm4, %v4320_v37, %v4324_v52  ;;  %v4347_v9 = vor.u32 %v4346_v24, %v4343_v60  ;;  %v2301_v13 = vshll.u32 %v4960_v35, 16  ;;  %v4339_v49 = vsel %vm6045_vm4, %v4334_v12, %v4338_v22  ;;  %v5900_v46 = vld [vmem:[%s5996_s29 + $0x88] ss:$8 sps:$4 sm:$0xff]   ;;  %v4967_v37 = vld [vmem:[%s5996_s29 + $0x94] sm:$0x1] }
  0xe6   : > { %v4361_v32 = vor.u32 %v4360_v1, %v4357_v50  ;;  %v2307_v33 = vshll.u32 %v4961_v25, 16  ;;  %v2312_v51 = vshrl.u32 %v4962_v21, 16  ;;  %v5229_v48 = vcombine.low %v4325_v30, %v4339_v49  ;;  %v5224_v1 = vld [vmem:[%s5996_s29 + $0x128] sm:$0xf]  ;;  %v5225_v30 = vld [vmem:[%s5996_s29 + $0x12c] sm:$0x1] }
  0xe7   : > { %v4348_v36 = vrot.slane %v4347_v9, 4  ;;  %v2300_v55 = vrot.slane %v2298_v34, 4  ;;  %v2303_v44 = vrot.slane %v2301_v13, 5  ;;  %v2315_v7 = vshll.u32 %v4962_v21, 16  ;;  %v5226_v9 = vld [vmem:[%s5996_s29 + $0x130] sm:$0xf] }
  0xe8   : > { %v4362_v28 = vrot.slane %v4361_v32, 4  ;;  %v2309_v53 = vrot.slane %v2307_v33, 5  ;;  %v2314_v41 = vrot.slane %v2312_v51, 4  ;;  %v2321_v27 = vshll.u32 %v4963_v4, 16 }
  0xe9   : > { %v4353_v10 = vsel %vm6045_vm4, %v4348_v36, %v4352_v63  ;;  %v2304_v29 = vor.u32 %v2303_v44, %v2300_v55  ;;  %v4369_v59 = vshrl.u32 %v5220_v15, 16  ;;  %v2317_v20 = vrot.slane %v2315_v7, 5  ;;  %v5227_v55 = vld [vmem:[%s5996_s29 + $0x134] sm:$0x1]  ;;  %s5240_s29 = sshll.u32 %s7057_s12, 6 }
  0xea   : > { %v4367_v19 = vsel %vm6045_vm4, %v4362_v28, %v4366_v17  ;;  %v4372_v58 = vshll.u32 %v5220_v15, 16  ;;  %v4378_v26 = vshll.u32 %v5221_v6, 16  ;;  %v2323_v52 = vrot.slane %v2321_v27, 5  ;;  %s7017_s5 = scalar_lea.vmem %s7047_s3, %s5240_s29 }
  0xeb   : > { %5603 = vmatmul.mubr.msk.bf16.gmra.mrb[4].mxu0 %vm390_vm3, %v5898_v47  ;;  %5479 = vmatmul.mubr.msk.bf16.vlgmr.msra.gmra.mrb[0].mxu1 %vm390_vm3, %v5896_v8  ;;  %v5230_v39 = vcombine.low %v4353_v10, %v4367_v19  ;;  %v2305_v11 = vrot.slane %v2304_v29, 4  ;;  %v4371_v40 = vrot.slane %v4369_v59, 4  ;;  %v2318_v14 = vor.u32 %v2317_v20, %v2314_v41 }
  0xec   : > { %5608 = vmatprep.mubr.msk.bf16.mxu0 %vm390_vm3, %v5229_v48  ;;  %5617 = vmatpush3.bf16.msra.mxu1 %v5974_v3  ;;  %v4374_v56 = vrot.slane %v4372_v58, 5  ;;  %v4380_v42 = vrot.slane %v4378_v26, 5  ;;  %v4383_v22 = vshrl.u32 %v5222_v0, 16  ;;  %v4386_v45 = vshll.u32 %v5222_v0, 16 }
  0xed   : > { %5482 = vmatprep.mubr.msk.bf16.mxu1 %vm390_vm3, %v5899_v43  ;;  %v2310_v62 = vsel %vm6045_vm4, %v2305_v11, %v2309_v53  ;;  %v4392_v57 = vshll.u32 %v5223_v16, 16  ;;  %v2326_v3 = vshrl.u32 %v4964_v54, 16  ;;  %v2319_v47 = vrot.slane %v2318_v14, 4 }
  0xee   : > { %v4375_v2 = vor.u32 %v4374_v56, %v4371_v40  ;;  %v4385_v5 = vrot.slane %v4383_v22, 4  ;;  %v2329_v18 = vshll.u32 %v4964_v54, 16  ;;  %v4388_v31 = vrot.slane %v4386_v45, 5 }
  0xef   : > { %v4394_v35 = vrot.slane %v4392_v57, 5  ;;  %v2328_v60 = vrot.slane %v2326_v3, 4  ;;  %v2335_v24 = vshll.u32 %v4965_v23, 16  ;;  %v2324_v63 = vsel %vm6045_vm4, %v2319_v47, %v2323_v52 }
  0xf0   : > { %v4376_v25 = vrot.slane %v4375_v2, 4  ;;  %v2331_v12 = vrot.slane %v2329_v18, 5  ;;  %v2340_v50 = vshrl.u32 %v4966_v61, 16  ;;  %v4971_v17 = vcombine.low %v2310_v62, %v2324_v63 }
  0xf1   : > { %v4389_v21 = vor.u32 %v4388_v31, %v4385_v5  ;;  %v2337_v8 = vrot.slane %v2335_v24, 5  ;;  %v2343_v43 = vshll.u32 %v4966_v61, 16  ;;  %v2349_v32 = vshll.u32 %v4967_v37, 16  ;;  %v5237_v61 = vld [vmem:[%s7046_s2] ss:$0 sm:$0xff] }
  0xf2   : > { %v4381_v34 = vsel %vm6045_vm4, %v4376_v25, %v4380_v42  ;;  %v2332_v13 = vor.u32 %v2331_v12, %v2328_v60  ;;  %v2342_v49 = vrot.slane %v2340_v50, 4  ;;  %v4397_v51 = vshrl.u32 %v5224_v1, 16 }
  0xf3   : > { %5609 = vmatmul.mubr.msk.bf16.vlgmr.msra.gmra.mrb[0].mxu0 %vm390_vm3, %v5230_v39  ;;  %5483 = vmatmul.mubr.msk.bf16.gmra.mrb[4].mxu1 %vm390_vm3, %v5900_v46  ;;  %v4390_v4 = vrot.slane %v4389_v21, 4  ;;  %v2345_v33 = vrot.slane %v2343_v43, 5  ;;  %v4400_v15 = vshll.u32 %v5224_v1, 16  ;;  %v2351_v36 = vrot.slane %v2349_v32, 5 }
  0xf4   : > { %5492 = vmatprep.mubr.msk.bf16.mxu1 %vm390_vm3, %v4971_v17  ;;  %v2333_v48 = vrot.slane %v2332_v13, 4  ;;  %v4406_v44 = vshll.u32 %v5225_v30, 16  ;;  %v4411_v6 = vshrl.u32 %v5226_v9, 16  ;;  %v4399_v41 = vrot.slane %v4397_v51, 4 }
  0xf5   : > { %v4395_v28 = vsel %vm6045_vm4, %v4390_v4, %v4394_v35  ;;  %v2346_v53 = vor.u32 %v2345_v33, %v2342_v49  ;;  %v4402_v7 = vrot.slane %v4400_v15, 5  ;;  %v4414_v59 = vshll.u32 %v5226_v9, 16 }
  0xf6   : > { %v5231_v10 = vcombine.low %v4381_v34, %v4395_v28  ;;  %v2338_v29 = vsel %vm6045_vm4, %v2333_v48, %v2337_v8  ;;  %v4413_v27 = vrot.slane %v4411_v6, 4  ;;  %v4420_v19 = vshll.u32 %v5227_v55, 16 }
  0xf7   : > { %v2347_v0 = vrot.slane %v2346_v53, 4  ;;  %v4403_v16 = vor.u32 %v4402_v7, %v4399_v41  ;;  %v4408_v26 = vrot.slane %v4406_v44, 5  ;;  %v4416_v54 = vrot.slane %v4414_v59, 5 }
  0xf8   : > { %5612 = vmatprep.mubr.msk.bf16.mxu0 %vm390_vm3, %v5231_v10  ;;  %v4422_v52 = vrot.slane %v4420_v19, 5 }
  0xf9   : > { %v2352_v20 = vsel %vm6045_vm4, %v2347_v0, %v2351_v36  ;;  %v4404_v58 = vrot.slane %v4403_v16, 4  ;;  %v4417_v11 = vor.u32 %v4416_v54, %v4413_v27 }
  0xfa   : > { %v4972_v39 = vcombine.low %v2338_v29, %v2352_v20 }
  0xfb   : > { %v4409_v40 = vsel %vm6045_vm4, %v4404_v58, %v4408_v26  ;;  %v4418_v14 = vrot.slane %v4417_v11, 4 }
  0xfd   : > { %v4423_v56 = vsel %vm6045_vm4, %v4418_v14, %v4422_v52 }
  0xfe   : > { %v5232_v42 = vcombine.low %v4409_v40, %v4423_v56 }
  0xff   : > { %5493 = vmatmul.mubr.msk.bf16.vlgmr.msra.gmra.mrb[4].mxu1 %vm390_vm3, %v4972_v39 }
 0x100   : > { %5613 = vmatmul.mubr.msk.bf16.gmra.mrb[4].mxu0 %vm390_vm3, %v5232_v42 }
 0x1be   : > { %v5480_v22 = vpop.f32.mrb[0].mxu1 }
 0x1bf   : > { %v2186_v23 = vpop.f32.mrb[1].mxu1 }
 0x1c0   : > { %v5481_v62 = vpop.f32.mrb[2].mxu1 }
 0x1c1   : > { %v2189_v45 = vpop.f32.mrb[3].mxu1 }
 0x1c6   : > { %v5610_v57 = vpop.f32.mrb[0].mxu0 }
 0x1c7   : > { %v5618_v3 = vadd.f32 %v5610_v57, %v5480_v22  ;;  %v4487_v46 = vpop.f32.mrb[1].mxu0 }
 0x1c8   : > { %v5619_v38 = vadd.f32 %v4487_v46, %v2186_v23  ;;  %v5611_v47 = vpop.f32.mrb[2].mxu0 }
 0x1c9   : > { %v4535_v2 = vadd.f32 %v5618_v3, %v5237_v61  ;;  %v5620_v5 = vadd.f32 %v5611_v47, %v5481_v62  ;;  %v4490_v18 = vpop.f32.mrb[3].mxu0 }
 0x1ca   : > { %v4533_v31 = vadd.f32 %v5619_v38, %v5237_v61  ;;  %v5621_v35 = vadd.f32 %v4490_v18, %v2189_v45 }
 0x1cb   : > { %4543 = vst.msk [vmem:[%s7017_s5 + $0x10] sm:$0xff] %vm390_vm3, %v4535_v2  ;;  %v4536_v37 = vadd.f32 %v5620_v5, %v5237_v61 }
 0x1cc   : > { %4541 = vst.msk [vmem:[%s7017_s5] sm:$0xff] %vm390_vm3, %v4533_v31  ;;  %v4534_v60 = vadd.f32 %v5621_v35, %v5237_v61 }
 0x1cd   : > { %4544 = vst.msk [vmem:[%s7017_s5 + $0x18] sm:$0xff] %vm390_vm3, %v4536_v37 }
 0x1ce   : > { %4542 = vst.msk [vmem:[%s7017_s5 + $0x8] sm:$0xff] %vm390_vm3, %v4534_v60 }
 0x1d2   : > { %v5494_v24 = vpop.f32.mrb[4].mxu1 }
 0x1d3   : > { %v2432_v63 = vpop.f32.mrb[5].mxu1  ;;  %v5614_v50 = vpop.f32.mrb[4].mxu0 }
 0x1d4   : > { %v5495_v25 = vpop.f32.mrb[6].mxu1  ;;  %v5622_v1 = vadd.f32 %v5614_v50, %v5494_v24  ;;  %v4503_v17 = vpop.f32.mrb[5].mxu0 }
 0x1d5   : > { %v2435_v12 = vpop.f32.mrb[7].mxu1  ;;  %v5623_v21 = vadd.f32 %v4503_v17, %v2432_v63  ;;  %v5615_v8 = vpop.f32.mrb[6].mxu0 }
 0x1d6   : > { %v4539_v43 = vadd.f32 %v5622_v1, %v5237_v61  ;;  %v5624_v30 = vadd.f32 %v5615_v8, %v5495_v25  ;;  %v4506_v9 = vpop.f32.mrb[7].mxu0 }
 0x1d7   : > { %v4537_v34 = vadd.f32 %v5623_v21, %v5237_v61  ;;  %v5625_v13 = vadd.f32 %v4506_v9, %v2435_v12 }
 0x1d8   : > { %4547 = vst.msk [vmem:[%s7017_s5 + $0x30] sm:$0xff] %vm390_vm3, %v4539_v43  ;;  %v4540_v49 = vadd.f32 %v5624_v30, %v5237_v61 }
 0x1d9   : > { %4545 = vst.msk [vmem:[%s7017_s5 + $0x20] sm:$0xff] %vm390_vm3, %v4537_v34  ;;  %v4538_v32 = vadd.f32 %v5625_v13, %v5237_v61 }
 0x1da   : > { %4548 = vst.msk [vmem:[%s7017_s5 + $0x38] sm:$0xff] %vm390_vm3, %v4540_v49 }
 0x1db   : > { %4546 = vst.msk [vmem:[%s7017_s5 + $0x28] sm:$0xff] %vm390_vm3, %v4538_v32 }
 0x1dc PF: > { %s13_s14 = sadd.s32 1, %s5924_s14   ;;  %s7052_s12 = smov %s5920_s13 }
 0x1dd   : > { %p10_p5 = scmp.ge.s32.totalorder %s13_s14, 4   ;;  %s7053_s13 = smov %s7055_s15 }
 0x1df   :  { %12 = sbr.rel (!%p10_p5) target bundleno = 2 (0x2), region = 102 }

</bundles_post_ra>
